<compile_context>
chip_gen: v6e
topology: v6e:2x2x1
jax: 0.10.0
libtpu: 0.0.40
codegen_flags: <defaults>
</compile_context>

<pallas_src>
import functools
import math

import jax
import jax.numpy as jnp
from jax.experimental import pallas as pl
from jax.experimental.pallas import tpu as pltpu


def _round_up(x, m):
    return (x + m - 1) // m * m


def _vmem_capacity_bytes():
    # 64 MiB per TensorCore on v7x, 128 MiB on v5e/v6e.
    try:
        return int(pltpu.get_tpu_info().vmem_capacity_bytes)
    except Exception:
        return 64 * 1024 * 1024          # conservative fallback (safe on v7x)


def _epilogue(xf32, y, t, gamma, beta, *, d_model, eps, out_dtype):
    """Gated combine + LayerNorm (torch semantics: unbiased std, eps on std)."""
    # sigmoid via EUP exp + approx reciprocal (off the VALU)
    g = pl.reciprocal(1.0 + jnp.exp(-t), approx=True)
    # TODO(synk): training-mode dropout on `y` not implemented (eval => identity).
    z = xf32 * g + y * (1.0 - g)
    mean = jnp.mean(z, axis=-1, keepdims=True)
    c = z - mean
    var_u = jnp.sum(c * c, axis=-1, keepdims=True) * (1.0 / (d_model - 1))
    # Exact reciprocal: only (tm, 1) elements, but it scales every output.
    inv = 1.0 / (jnp.sqrt(var_u) + eps)
    return (gamma * (c * inv) + beta).astype(out_dtype)


# ----------------------------- resident-weights kernel -----------------------
def _highway_kernel_resident(x_ref, w1c_ref, b1c_ref, w2l_ref, b2l_ref,
                             w2g_ref, b2g_ref, gamma_ref, beta_ref, o_ref,
                             *, d_model, d_hidden, eps, compute_dtype):
    x_c = x_ref[...].astype(compute_dtype)
    # Fused stage-1 GEMM for both FFNs (shared LHS x): one MXU pass.
    h = jnp.dot(x_c, w1c_ref[...], preferred_element_type=compute_dtype)
    h = jnp.maximum(h + b1c_ref[...], 0).astype(compute_dtype)
    y = jnp.dot(h[:, :d_hidden], w2l_ref[...],
                preferred_element_type=jnp.float32) + b2l_ref[...]
    t = jnp.dot(h[:, d_hidden:], w2g_ref[...],
                preferred_element_type=jnp.float32) + b2g_ref[...]
    o_ref[...] = _epilogue(x_ref[...].astype(jnp.float32), y, t,
                           gamma_ref[...], beta_ref[...],
                           d_model=d_model, eps=eps, out_dtype=o_ref.dtype)


# ----------------------------- tiled-reduction fallback ----------------------
def _highway_kernel_tiled(x_ref, w1c_ref, b1c_ref, w2l_ref, b2l_ref,
                          w2g_ref, b2g_ref, gamma_ref, beta_ref, o_ref,
                          acc_l_ref, acc_g_ref, xc_ref,
                          *, d_model, tk, eps, compute_dtype):
    k = pl.program_id(1)

    @pl.when(k == 0)
    def _():
        acc_l_ref[...] = jnp.zeros_like(acc_l_ref)
        acc_g_ref[...] = jnp.zeros_like(acc_g_ref)
        # hoist the x cast out of the per-k work
        xc_ref[...] = x_ref[...].astype(compute_dtype)

    x_c = xc_ref[...]
    h = jnp.dot(x_c, w1c_ref[...], preferred_element_type=compute_dtype)
    h = jnp.maximum(h + b1c_ref[...], 0).astype(compute_dtype)
    acc_l_ref[...] += jnp.dot(h[:, :tk], w2l_ref[...],
                              preferred_element_type=jnp.float32)
    acc_g_ref[...] += jnp.dot(h[:, tk:], w2g_ref[...],
                              preferred_element_type=jnp.float32)

    @pl.when(k == pl.num_programs(1) - 1)
    def _():
        y = acc_l_ref[...] + b2l_ref[...]
        t = acc_g_ref[...] + b2g_ref[...]
        o_ref[...] = _epilogue(x_ref[...].astype(jnp.float32), y, t,
                               gamma_ref[...], beta_ref[...],
                               d_model=d_model, eps=eps, out_dtype=o_ref.dtype)


# ----------------------------- wrapper ---------------------------------------
def highway_block(x, layer_params, gate_params, gamma, beta, *,
                  eps=1e-6, tm=256, compute_dtype=jnp.bfloat16, force_tk=None):
    """x: [B, S, d_model].  layer_params/gate_params = (W1, b1, W2, b2)."""
    w1l, b1l, w2l, b2l = layer_params
    w1g, b1g, w2g, b2g = gate_params
    B, S, d_model = x.shape
    d_hidden = w1l.shape[1]
    rows = B * S

    # ---- row tile: prefer >= 2 row blocks so v7x's two TensorCores both work
    tm = max(8, min(_round_up(tm, 8), _round_up(rows, 8)))
    if _round_up(rows, tm) // tm < 2 and rows > 8:
        tm = _round_up((rows + 1) // 2, 8)
    rows_p = _round_up(rows, tm)
    n_row_blocks = rows_p // tm

    x2 = x.reshape(rows, d_model)
    if rows_p != rows:
        x2 = jnp.pad(x2, ((0, rows_p - rows), (0, 0)))

    cd = jnp.dtype(compute_dtype)
    csz, xsz, osz, f32 = cd.itemsize, x.dtype.itemsize, x.dtype.itemsize, 4

    # ---- generation-aware VMEM budget (48 MiB v7x, 96 MiB v5e/v6e) ----
    vmem_budget = (_vmem_capacity_bytes() * 3) // 4
    w_bytes = 4 * d_model * d_hidden * csz          # W1l + W1g + W2l + W2g

    def resident_estimate():
        return (2 * tm * d_model * (xsz + osz)                    # x / out tiles
                + 2 * (w_bytes + 2 * d_hidden * csz
                       + 4 * d_model * f32)                       # weights + params
                + tm * 2 * d_hidden * csz                         # hidden activations
                + 6 * tm * d_model * f32)                         # f32 epilogue temps

    def tiled_estimate(tk_):
        return (2 * tm * d_model * (xsz + osz)
                + 2 * (4 * d_model * tk_ + 2 * tk_) * csz         # W1/W2/b1 chunks
                + 2 * 4 * d_model * f32                           # b2 / gamma / beta
                + 2 * tm * d_model * f32                          # acc_l / acc_g
                + tm * d_model * csz                              # cached bf16 x
                + tm * 2 * tk_ * csz                              # hidden activations
                + 6 * tm * d_model * f32)

    if force_tk is not None:
        tk = force_tk
    elif resident_estimate() <= vmem_budget:
        tk = d_hidden                                              # weights resident
    else:
        tk = 128
        for cand in range(d_hidden, 127, -128):
            if d_hidden % cand == 0 and tiled_estimate(cand) <= vmem_budget:
                tk = cand
                break
    if tk >= d_hidden or d_hidden % tk != 0 or tk % 128 != 0:
        tk = d_hidden
    n_k = d_hidden // tk

    # ---- host-side weight prep: fuse [W1l | W1g] per contiguous hidden chunk
    w1l_r = w1l.astype(cd).reshape(d_model, n_k, tk)
    w1g_r = w1g.astype(cd).reshape(d_model, n_k, tk)
    w1cat = jnp.transpose(jnp.concatenate([w1l_r, w1g_r], axis=-1),
                          (1, 0, 2))                       # (n_k, d_model, 2*tk)
    b1cat = jnp.concatenate([b1l.astype(cd).reshape(n_k, tk),
                             b1g.astype(cd).reshape(n_k, tk)],
                            axis=-1).reshape(n_k, 1, 2 * tk)
    w2l_c, w2g_c = w2l.astype(cd), w2g.astype(cd)
    b2l_2 = b2l.reshape(1, d_model).astype(jnp.float32)
    b2g_2 = b2g.reshape(1, d_model).astype(jnp.float32)
    gamma_2 = gamma.reshape(1, d_model).astype(jnp.float32)
    beta_2 = beta.reshape(1, d_model).astype(jnp.float32)

    est = resident_estimate() if n_k == 1 else tiled_estimate(tk)
    vmem_limit = int(min(vmem_budget, max(32 * 1024 * 1024, est * 3 // 2)))

    weight_reads = 1 if n_k == 1 else n_row_blocks
    cost = pl.CostEstimate(
        flops=int(8 * rows_p * d_model * d_hidden),                # 2 FFNs x 2 matmuls
        transcendentals=int(rows_p * d_model + rows_p),            # exp + sqrt
        bytes_accessed=int(rows_p * d_model * (xsz + osz)
                           + weight_reads * w_bytes),
    )

    if n_k == 1:
        kernel = functools.partial(_highway_kernel_resident, d_model=d_model,
                                   d_hidden=d_hidden, eps=eps, compute_dtype=cd)
        out2 = pl.pallas_call(
            kernel,
            out_shape=jax.ShapeDtypeStruct((rows_p, d_model), x.dtype),
            grid_spec=pltpu.PrefetchScalarGridSpec(
                num_scalar_prefetch=0,
                grid=(n_row_blocks,),
                in_specs=[
                    pl.BlockSpec((tm, d_model), lambda i: (i, 0)),            # x rows
                    pl.BlockSpec((d_model, 2 * d_hidden), lambda i: (0, 0)),  # [W1l|W1g]
                    pl.BlockSpec((1, 2 * d_hidden), lambda i: (0, 0)),        # [b1l|b1g]
                    pl.BlockSpec((d_hidden, d_model), lambda i: (0, 0)),      # W2 layer
                    pl.BlockSpec((1, d_model), lambda i: (0, 0)),             # b2 layer
                    pl.BlockSpec((d_hidden, d_model), lambda i: (0, 0)),      # W2 gate
                    pl.BlockSpec((1, d_model), lambda i: (0, 0)),             # b2 gate
                    pl.BlockSpec((1, d_model), lambda i: (0, 0)),             # gamma
                    pl.BlockSpec((1, d_model), lambda i: (0, 0)),             # beta
                ],
                out_specs=pl.BlockSpec((tm, d_model), lambda i: (i, 0)),
            ),
            compiler_params=pltpu.CompilerParams(
                dimension_semantics=("parallel",),
                vmem_limit_bytes=vmem_limit),
            cost_estimate=cost,
        )(x2, w1cat.reshape(d_model, 2 * d_hidden),
          b1cat.reshape(1, 2 * d_hidden),
          w2l_c, b2l_2, w2g_c, b2g_2, gamma_2, beta_2)
    else:
        kernel = functools.partial(_highway_kernel_tiled, d_model=d_model,
                                   tk=tk, eps=eps, compute_dtype=cd)
        out2 = pl.pallas_call(
            kernel,
            out_shape=jax.ShapeDtypeStruct((rows_p, d_model), x.dtype),
            grid_spec=pltpu.PrefetchScalarGridSpec(
                num_scalar_prefetch=0,
                grid=(n_row_blocks, n_k),
                in_specs=[
                    pl.BlockSpec((tm, d_model), lambda i, k: (i, 0)),         # x rows
                    pl.BlockSpec((None, d_model, 2 * tk),
                                 lambda i, k: (k, 0, 0)),                     # [W1l|W1g] chunk
                    pl.BlockSpec((None, 1, 2 * tk),
                                 lambda i, k: (k, 0, 0)),                     # [b1l|b1g] chunk
                    pl.BlockSpec((tk, d_model), lambda i, k: (k, 0)),         # W2 layer chunk
                    pl.BlockSpec((1, d_model), lambda i, k: (0, 0)),          # b2 layer
                    pl.BlockSpec((tk, d_model), lambda i, k: (k, 0)),         # W2 gate chunk
                    pl.BlockSpec((1, d_model), lambda i, k: (0, 0)),          # b2 gate
                    pl.BlockSpec((1, d_model), lambda i, k: (0, 0)),          # gamma
                    pl.BlockSpec((1, d_model), lambda i, k: (0, 0)),          # beta
                ],
                out_specs=pl.BlockSpec((tm, d_model), lambda i, k: (i, 0)),
                scratch_shapes=[pltpu.VMEM((tm, d_model), jnp.float32),       # layer acc
                                pltpu.VMEM((tm, d_model), jnp.float32),       # gate acc
                                pltpu.VMEM((tm, d_model), cd)],               # cached x
            ),
            compiler_params=pltpu.CompilerParams(
                dimension_semantics=("parallel", "arbitrary"),
                vmem_limit_bytes=vmem_limit),
            cost_estimate=cost,
        )(x2, w1cat, b1cat, w2l_c, b2l_2, w2g_c, b2g_2, gamma_2, beta_2)

    return out2[:rows].reshape(B, S, d_model)


def reference_jax(x, layer_params, gate_params, gamma, beta, eps=1e-6):
    w1l, b1l, w2l, b2l = layer_params
    w1g, b1g, w2g, b2g = gate_params
    y = jnp.maximum(x @ w1l + b1l, 0.0) @ w2l + b2l
    g = jax.nn.sigmoid(jnp.maximum(x @ w1g + b1g, 0.0) @ w2g + b2g)
    z = x * g + y * (1.0 - g)
    mean = z.mean(-1, keepdims=True)
    std = jnp.sqrt(((z - mean) ** 2).sum(-1, keepdims=True) / (z.shape[-1] - 1))
    return gamma * (z - mean) / (std + eps) + beta


if __name__ == "__main__":
    B, S, d_model, d_hidden = 2, 64, 128, 512

    key = jax.random.PRNGKey(0)
    ks = jax.random.split(key, 11)
    stdv1 = 1.0 / math.sqrt(d_model)
    stdv2 = 1.0 / math.sqrt(d_hidden)

    def u(k, shape, s):
        return jax.random.uniform(k, shape, jnp.float32, -s, s)

    x = jax.random.normal(ks[0], (B, S, d_model), dtype=jnp.float32)
    layer_params = (u(ks[1], (d_model, d_hidden), stdv1),
                    u(ks[2], (d_hidden,), stdv1),
                    u(ks[3], (d_hidden, d_model), stdv2),
                    u(ks[4], (d_model,), stdv2))
    gate_params = (u(ks[5], (d_model, d_hidden), stdv1),
                   u(ks[6], (d_hidden,), stdv1),
                   u(ks[7], (d_hidden, d_model), stdv2),
                   u(ks[8], (d_model,), stdv2))
    gamma = 1.0 + 0.1 * jax.random.normal(ks[9], (d_model,), jnp.float32)
    beta = 0.1 * jax.random.normal(ks[10], (d_model,), jnp.float32)

    ref = reference_jax(x, layer_params, gate_params, gamma, beta)

    # Accuracy-validation path: f32 MXU operands, weights VMEM-resident.
    out_f32 = highway_block(x, layer_params, gate_params, gamma, beta,
                            compute_dtype=jnp.float32)
    out_f32 = jax.block_until_ready(out_f32)
    assert out_f32.shape == (B, S, d_model)
    assert jnp.allclose(out_f32, ref, atol=1e-2, rtol=1e-2), "f32 path mismatch"

    # Default fast path: bf16 MXU operands (all generations), weights resident.
    out_bf16 = highway_block(x, layer_params, gate_params, gamma, beta)
    out_bf16 = jax.block_until_ready(out_bf16)
    assert out_bf16.shape == (B, S, d_model)
    assert jnp.allclose(out_bf16, ref, atol=5e-2, rtol=5e-2), "bf16 path mismatch"

    # Exercise the tiled-reduction fallback (simulates weights too big for VMEM).
    out_tiled = highway_block(x, layer_params, gate_params, gamma, beta,
                              compute_dtype=jnp.float32, force_tk=128)
    out_tiled = jax.block_until_ready(out_tiled)
    assert jnp.allclose(out_tiled, ref, atol=1e-2, rtol=1e-2), "tiled path mismatch"

    print("KERNEL_OK")
</pallas_src>

<mosaic_0001>
module attributes {stable_mosaic.version = 11 : i64} {
  func.func @_highway_kernel_resident(%arg0: i32, %arg1: memref<64x128xf32, #tpu.memory_space<vmem>>, %arg2: memref<128x1024xf32, #tpu.memory_space<vmem>>, %arg3: memref<1x1024xf32, #tpu.memory_space<vmem>>, %arg4: memref<512x128xf32, #tpu.memory_space<vmem>>, %arg5: memref<1x128xf32, #tpu.memory_space<vmem>>, %arg6: memref<512x128xf32, #tpu.memory_space<vmem>>, %arg7: memref<1x128xf32, #tpu.memory_space<vmem>>, %arg8: memref<1x128xf32, #tpu.memory_space<vmem>>, %arg9: memref<1x128xf32, #tpu.memory_space<vmem>>, %arg10: memref<64x128xf32, #tpu.memory_space<vmem>>) attributes {dimension_semantics = [#tpu.dimension_semantics<parallel>], iteration_bounds = array<i64: 2>, scalar_prefetch = 0 : i64, scratch_operands = 0 : i64, tpu.core_type = #tpu.core_type<tc>, window_params = [{transform_indices = @transform_0, window_bounds = array<i64: 64, 128>}, {pipeline_mode = #tpu.pipeline_mode<synchronous>, transform_indices = @transform_1, window_bounds = array<i64: 128, 1024>}, {pipeline_mode = #tpu.pipeline_mode<synchronous>, transform_indices = @transform_2, window_bounds = array<i64: 1, 1024>}, {pipeline_mode = #tpu.pipeline_mode<synchronous>, transform_indices = @transform_3, window_bounds = array<i64: 512, 128>}, {pipeline_mode = #tpu.pipeline_mode<synchronous>, transform_indices = @transform_4, window_bounds = array<i64: 1, 128>}, {pipeline_mode = #tpu.pipeline_mode<synchronous>, transform_indices = @transform_5, window_bounds = array<i64: 512, 128>}, {pipeline_mode = #tpu.pipeline_mode<synchronous>, transform_indices = @transform_6, window_bounds = array<i64: 1, 128>}, {pipeline_mode = #tpu.pipeline_mode<synchronous>, transform_indices = @transform_7, window_bounds = array<i64: 1, 128>}, {pipeline_mode = #tpu.pipeline_mode<synchronous>, transform_indices = @transform_8, window_bounds = array<i64: 1, 128>}, {transform_indices = @transform_9, window_bounds = array<i64: 64, 128>}]} {
    %c0 = arith.constant 0 : index
    %c0_0 = arith.constant 0 : index
    %0 = vector.load %arg1[%c0, %c0_0] : memref<64x128xf32, #tpu.memory_space<vmem>>, vector<64x128xf32>
    %c0_1 = arith.constant 0 : index
    %c0_2 = arith.constant 0 : index
    %1 = vector.load %arg2[%c0_1, %c0_2] : memref<128x1024xf32, #tpu.memory_space<vmem>>, vector<128x1024xf32>
    %cst = arith.constant dense<0.000000e+00> : vector<64x1024xf32>
    %2 = tpu.matmul %0, %1, %cst {dimension_numbers = #tpu.dot_dimension_numbers<[1], [0], [0], [1], [0, 0, 1, 1], [], []>} : vector<64x128xf32>, vector<128x1024xf32>, vector<64x1024xf32> -> vector<64x1024xf32>
    %c0_3 = arith.constant 0 : index
    %c0_4 = arith.constant 0 : index
    %3 = vector.load %arg3[%c0_3, %c0_4] : memref<1x1024xf32, #tpu.memory_space<vmem>>, vector<1x1024xf32>
    %4 = vector.broadcast %3 : vector<1x1024xf32> to vector<64x1024xf32>
    %5 = arith.addf %2, %4 : vector<64x1024xf32>
    %cst_5 = arith.constant 0.000000e+00 : f32
    %6 = vector.broadcast %cst_5 : f32 to vector<64x1024xf32>
    %7 = arith.maximumf %5, %6 : vector<64x1024xf32>
    %8 = vector.extract_strided_slice %7 {offsets = [0, 0], sizes = [64, 512], strides = [1, 1]} : vector<64x1024xf32> to vector<64x512xf32>
    %c0_6 = arith.constant 0 : index
    %c0_7 = arith.constant 0 : index
    %9 = vector.load %arg4[%c0_6, %c0_7] : memref<512x128xf32, #tpu.memory_space<vmem>>, vector<512x128xf32>
    %cst_8 = arith.constant dense<0.000000e+00> : vector<64x128xf32>
    %10 = tpu.matmul %8, %9, %cst_8 {dimension_numbers = #tpu.dot_dimension_numbers<[1], [0], [0], [1], [0, 0, 1, 1], [], []>} : vector<64x512xf32>, vector<512x128xf32>, vector<64x128xf32> -> vector<64x128xf32>
    %c0_9 = arith.constant 0 : index
    %c0_10 = arith.constant 0 : index
    %11 = vector.load %arg5[%c0_9, %c0_10] : memref<1x128xf32, #tpu.memory_space<vmem>>, vector<1x128xf32>
    %12 = vector.broadcast %11 : vector<1x128xf32> to vector<64x128xf32>
    %13 = arith.addf %10, %12 : vector<64x128xf32>
    %14 = vector.extract_strided_slice %7 {offsets = [0, 512], sizes = [64, 512], strides = [1, 1]} : vector<64x1024xf32> to vector<64x512xf32>
    %c0_11 = arith.constant 0 : index
    %c0_12 = arith.constant 0 : index
    %15 = vector.load %arg6[%c0_11, %c0_12] : memref<512x128xf32, #tpu.memory_space<vmem>>, vector<512x128xf32>
    %cst_13 = arith.constant dense<0.000000e+00> : vector<64x128xf32>
    %16 = tpu.matmul %14, %15, %cst_13 {dimension_numbers = #tpu.dot_dimension_numbers<[1], [0], [0], [1], [0, 0, 1, 1], [], []>} : vector<64x512xf32>, vector<512x128xf32>, vector<64x128xf32> -> vector<64x128xf32>
    %c0_14 = arith.constant 0 : index
    %c0_15 = arith.constant 0 : index
    %17 = vector.load %arg7[%c0_14, %c0_15] : memref<1x128xf32, #tpu.memory_space<vmem>>, vector<1x128xf32>
    %18 = vector.broadcast %17 : vector<1x128xf32> to vector<64x128xf32>
    %19 = arith.addf %16, %18 : vector<64x128xf32>
    %c0_16 = arith.constant 0 : index
    %c0_17 = arith.constant 0 : index
    %20 = vector.load %arg1[%c0_16, %c0_17] : memref<64x128xf32, #tpu.memory_space<vmem>>, vector<64x128xf32>
    %c0_18 = arith.constant 0 : index
    %c0_19 = arith.constant 0 : index
    %21 = vector.load %arg8[%c0_18, %c0_19] : memref<1x128xf32, #tpu.memory_space<vmem>>, vector<1x128xf32>
    %c0_20 = arith.constant 0 : index
    %c0_21 = arith.constant 0 : index
    %22 = vector.load %arg9[%c0_20, %c0_21] : memref<1x128xf32, #tpu.memory_space<vmem>>, vector<1x128xf32>
    %cst_22 = arith.constant 0.000000e+00 : f32
    %23 = vector.broadcast %cst_22 : f32 to vector<64x128xf32>
    %24 = arith.subf %23, %19 : vector<64x128xf32>
    %25 = math.exp %24 : vector<64x128xf32>
    %cst_23 = arith.constant 1.000000e+00 : f32
    %26 = vector.broadcast %cst_23 : f32 to vector<64x128xf32>
    %27 = arith.addf %26, %25 : vector<64x128xf32>
    %28 = tpu.reciprocal %27 {approx = true} : vector<64x128xf32> -> vector<64x128xf32>
    %29 = arith.mulf %20, %28 : vector<64x128xf32>
    %cst_24 = arith.constant 1.000000e+00 : f32
    %30 = vector.broadcast %cst_24 : f32 to vector<64x128xf32>
    %31 = arith.subf %30, %28 : vector<64x128xf32>
    %32 = arith.mulf %13, %31 : vector<64x128xf32>
    %33 = arith.addf %29, %32 : vector<64x128xf32>
    %cst_25 = arith.constant dense<0.000000e+00> : vector<64xf32>
    %34 = vector.multi_reduction <add>, %33, %cst_25 [1] : vector<64x128xf32> to vector<64xf32>
    %35 = vector.shape_cast %34 : vector<64xf32> to vector<64x1xf32>
    %cst_26 = arith.constant 1.280000e+02 : f32
    %36 = vector.broadcast %cst_26 : f32 to vector<64x1xf32>
    %37 = arith.divf %35, %36 : vector<64x1xf32>
    %38 = vector.broadcast %37 : vector<64x1xf32> to vector<64x128xf32>
    %39 = arith.subf %33, %38 : vector<64x128xf32>
    %40 = arith.mulf %39, %39 : vector<64x128xf32>
    %cst_27 = arith.constant dense<0.000000e+00> : vector<64xf32>
    %41 = vector.multi_reduction <add>, %40, %cst_27 [1] : vector<64x128xf32> to vector<64xf32>
    %42 = vector.shape_cast %41 : vector<64xf32> to vector<64x1xf32>
    %cst_28 = arith.constant 0.00787401571 : f32
    %43 = vector.broadcast %cst_28 : f32 to vector<64x1xf32>
    %44 = arith.mulf %42, %43 : vector<64x1xf32>
    %45 = math.sqrt %44 : vector<64x1xf32>
    %cst_29 = arith.constant 9.99999997E-7 : f32
    %46 = vector.broadcast %cst_29 : f32 to vector<64x1xf32>
    %47 = arith.addf %45, %46 : vector<64x1xf32>
    %cst_30 = arith.constant 1.000000e+00 : f32
    %48 = vector.broadcast %cst_30 : f32 to vector<64x1xf32>
    %49 = arith.divf %48, %47 : vector<64x1xf32>
    %50 = vector.broadcast %49 : vector<64x1xf32> to vector<64x128xf32>
    %51 = arith.mulf %39, %50 : vector<64x128xf32>
    %52 = vector.broadcast %21 : vector<1x128xf32> to vector<64x128xf32>
    %53 = arith.mulf %52, %51 : vector<64x128xf32>
    %54 = vector.broadcast %22 : vector<1x128xf32> to vector<64x128xf32>
    %55 = arith.addf %53, %54 : vector<64x128xf32>
    %c0_31 = arith.constant 0 : index
    %c0_32 = arith.constant 0 : index
    %56 = vector.load %arg10[%c0_31, %c0_32] : memref<64x128xf32, #tpu.memory_space<vmem>>, vector<64x128xf32>
    tpu.vector_store %arg10[%c0_31, %c0_32], %55 {strides = array<i32>} : memref<64x128xf32, #tpu.memory_space<vmem>>, vector<64x128xf32>,
    return
  }
  func.func @transform_0(%arg0: i32) -> (i32, i32) {
    %c0_i32 = arith.constant 0 : i32
    %c0_i32_0 = arith.constant 0 : i32
    return %arg0, %c0_i32 : i32, i32
  }
  func.func @transform_1(%arg0: i32) -> (i32, i32) {
    %c0_i32 = arith.constant 0 : i32
    %c0_i32_0 = arith.constant 0 : i32
    %c0_i32_1 = arith.constant 0 : i32
    return %c0_i32, %c0_i32_0 : i32, i32
  }
  func.func @transform_2(%arg0: i32) -> (i32, i32) {
    %c0_i32 = arith.constant 0 : i32
    %c0_i32_0 = arith.constant 0 : i32
    %c0_i32_1 = arith.constant 0 : i32
    return %c0_i32, %c0_i32_0 : i32, i32
  }
  func.func @transform_3(%arg0: i32) -> (i32, i32) {
    %c0_i32 = arith.constant 0 : i32
    %c0_i32_0 = arith.constant 0 : i32
    %c0_i32_1 = arith.constant 0 : i32
    return %c0_i32, %c0_i32_0 : i32, i32
  }
  func.func @transform_4(%arg0: i32) -> (i32, i32) {
    %c0_i32 = arith.constant 0 : i32
    %c0_i32_0 = arith.constant 0 : i32
    %c0_i32_1 = arith.constant 0 : i32
    return %c0_i32, %c0_i32_0 : i32, i32
  }
  func.func @transform_5(%arg0: i32) -> (i32, i32) {
    %c0_i32 = arith.constant 0 : i32
    %c0_i32_0 = arith.constant 0 : i32
    %c0_i32_1 = arith.constant 0 : i32
    return %c0_i32, %c0_i32_0 : i32, i32
  }
  func.func @transform_6(%arg0: i32) -> (i32, i32) {
    %c0_i32 = arith.constant 0 : i32
    %c0_i32_0 = arith.constant 0 : i32
    %c0_i32_1 = arith.constant 0 : i32
    return %c0_i32, %c0_i32_0 : i32, i32
  }
  func.func @transform_7(%arg0: i32) -> (i32, i32) {
    %c0_i32 = arith.constant 0 : i32
    %c0_i32_0 = arith.constant 0 : i32
    %c0_i32_1 = arith.constant 0 : i32
    return %c0_i32, %c0_i32_0 : i32, i32
  }
  func.func @transform_8(%arg0: i32) -> (i32, i32) {
    %c0_i32 = arith.constant 0 : i32
    %c0_i32_0 = arith.constant 0 : i32
    %c0_i32_1 = arith.constant 0 : i32
    return %c0_i32, %c0_i32_0 : i32, i32
  }
  func.func @transform_9(%arg0: i32) -> (i32, i32) {
    %c0_i32 = arith.constant 0 : i32
    %c0_i32_0 = arith.constant 0 : i32
    return %arg0, %c0_i32 : i32, i32
  }
}

</mosaic_0001>

<bundles_post_ra>
// kernel: tpu_custom_call.1
= control target key start
LH: loop header
LB: loop body
LE: loop exit
PB: predicated region body
PF: predicated region fallthrough
CT: control target
= control target key end

     0   :  { %s3276_s0 = inlined_call_operand.hbm [shape: f32[128,128], index: 0, kind: input, shape index: {}]   ;;  %s3277_s1 = inlined_call_operand.hbm [shape: f32[128,1024], index: 1, kind: input, shape index: {}]   ;;  %s3278_s2 = inlined_call_operand.hbm [shape: f32[1,1024], index: 2, kind: input, shape index: {}]   ;;  %s3279_s3 = inlined_call_operand.hbm [shape: f32[512,128], index: 3, kind: input, shape index: {}]   ;;  %s3280_s4 = inlined_call_operand.vmem [shape: f32[1,128], index: 4, kind: input, shape index: {}]   ;;  %s3281_s5 = inlined_call_operand.hbm [shape: f32[512,128], index: 5, kind: input, shape index: {}]   ;;  %s3282_s6 = inlined_call_operand.vmem [shape: f32[1,128], index: 6, kind: input, shape index: {}]   ;;  %s3283_s7 = inlined_call_operand.vmem [shape: f32[1,128], index: 7, kind: input, shape index: {}]   ;;  %s3284_s8 = inlined_call_operand.vmem [shape: f32[1,128], index: 8, kind: input, shape index: {}]   ;;  %s3285_s9 = inlined_call_operand.hbm [shape: f32[128,128], index: 9, kind: output, shape index: {}]  }
   0x1   :  { %3292 = sst [smem:[#allocation16_spill]] %s3277_s1 }
   0x2   :  { %3293 = sst [smem:[#allocation17_spill]] %s3278_s2 }
   0x3   :  { %3294 = sst [smem:[#allocation18_spill]] %s3279_s3 }
   0x4   :  { %14 = vsyncpa [#allocation3], 0 }
   0x5   :  { %16 = vsyncpa [#allocation3 + $0x1], 0 }
   0x6   :  { %17 = vsyncpa [#allocation6], 0 }
   0x7   :  { %18 = vsyncpa [#allocation9], 0 }
   0x8   :  { %19 = vsyncpa [#allocation4], 0 }
   0x9   :  { %21 = vsyncpa [#allocation4 + $0x1], 0  ;;  %s2740_s30 = smov 0   ;;  %s2742_s10 = smov 0  }
   0xa   :  { %s2744_s11 = smov 0   ;;  %s2746_s12 = smov 0  }
   0xb LB: > { %s2761_s13 = sadd.s32 4294967295, %s2675_s12   ;;  %s2053_s14 = sadd.s32 4294967294, %s2675_s12   ;;  %s2675_s12 = sphi %s2746_s12, %s3319_s12   ;;  %s2671_s11 = sphi %s2744_s11, %s3318_s11   ;;  %s2667_s10 = sphi %s2742_s10, %s3317_s10   ;;  %s2663_s30 = sphi %s2740_s30, %s3316_s30  }
   0xc   : > { %p47_p0 = scmp.ne.s32.totalorder %s2667_s10, %s2663_s30  ;;  %p3286_p1 = scmp.eq.s32.totalorder %s2761_s13, 0 }
   0xd   : > { %p245_p3 = scmp.eq.s32.totalorder %s2053_s14, 1  ;;  %p2054_p5 = scmp.ge.s32.totalorder %s2675_s12, 1 }
   0xe   : > { %p2770_p4 = por %p3286_p1, %p47_p0  ;;  %p252_p7 = scmp.lt.s32.totalorder %s2675_s12, 3 }
   0xf   : > { %p2775_p6 = por %p245_p3, %p47_p0  ;;  %s2677_s18 = smov [#allocation5]  }
  0x10   : > { %s3295_s15 = scalar_select %p2770_p4, 1, 0 }
  0x11   : > { %s3296_s16 = scalar_select %p2775_p6, 1, 0 }
  0x12   : > { %p2780_p8 = pnand %p2054_p5, %p252_p7  ;;  %s264_s19 = sshll.u32 %s2677_s18, 4  ;;  %s265_s19 = int_to_ptr.vmem [resolvable:$true] %s264_s19 }
  0x13   : > { %s2678_s21 = smov [#allocation8]   ;;  %s2482_s23 = scalar_lea.vmem %s265_s19, 16384 }
  0x14   : > { %s3297_s17 = scalar_select %p2780_p8, 1, 0 }
  0x15   : > { %p2325_p9 = pneg %p2780_p8  ;;  %s288_s22 = sshll.u32 %s2678_s21, 4  ;;  %s289_s22 = int_to_ptr.vmem [resolvable:$true] %s288_s22 }
  0x16   : > { %p2483_p13 = scmp.ne.s32.totalorder %s265_s19, %s2482_s23  ;;  %p2490_p5 = scmp.lt.s32.totalorder %s265_s19, %s265_s19 }
  0x17   : > { %p2789_p11 = pnand %p2325_p9, %p3286_p1  ;;  %p2491_p7 = scmp.lt.s32.totalorder %s2482_s23, %s2482_s23 }
  0x19   : > { %p2473_p12 = pneg %p2789_p11  ;;  %p2492_p10 = por %p2491_p7, %p2490_p5 }
  0x1b   : > { %p2485_p0 = pnand %p2483_p13, %p2473_p12 }
  0x1d   : > { %p2486_p3 = pneg %p2485_p0 }
  0x1f   : > { %p2493_p9 = pnand %p2492_p10, %p2486_p3 }
  0x21   : > { %2496 = shalt.err (!%p2493_p9)
}
  0x22   : > { %s2679_s24 = smov 1024   ;;  %s2680_s25 = smov 64  }
  0x23   : > { %s3299_s1 = sld [smem:[#allocation16_spill]]  ;;  %s2508_s28 = scalar_lea.vmem %s289_s22, 8192 }
  0x24   : > { %p2509_p1 = scmp.ne.s32.totalorder %s289_s22, %s2508_s28  ;;  %p2516_p2 = scmp.lt.s32.totalorder %s289_s22, %s289_s22 }
  0x25   : > { %p2517_p6 = scmp.lt.s32.totalorder %s2508_s28, %s2508_s28 }
  0x26   : > { %p2511_p13 = pnand %p2509_p1, %p2473_p12 }
  0x27   : > { %p2518_p5 = por %p2517_p6, %p2516_p2 }
  0x28   : > { %p2512_p0 = pneg %p2511_p13 }
  0x29   : > { %2328 = dma.hbm_to_vmem [thread:$0]  (!%p2789_p11), %s3299_s1, 16384, %s265_s19, [#allocation6], %s2679_s24, %s2679_s24, %s2680_s25  }
  0x2a   : > { %p2519_p10 = pnand %p2518_p5, %p2512_p0 }
  0x2c   : > { %2522 = shalt.err (!%p2519_p10)
}
  0x2d   : > { %s3289_s29 = smov 128   ;;  %s3290_s14 = smov 8  }
  0x2e   : > { %s3300_s3 = sld [smem:[#allocation18_spill]]  ;;  %s2683_s21 = smov [#allocation7]  }
  0x2f   : > { %s278_s23 = sshll.u32 %s2683_s21, 4  ;;  %s2684_s24 = smov [#allocation10]   ;;  %s279_s23 = int_to_ptr.vmem [resolvable:$true] %s278_s23 }
  0x30   : > { %s304_s25 = sshll.u32 %s2684_s24, 4  ;;  %s2534_s26 = scalar_lea.vmem %s279_s23, 128  ;;  %s305_s25 = int_to_ptr.vmem [resolvable:$true] %s304_s25 }
  0x31   : > { %p2535_p1 = scmp.ne.s32.totalorder %s279_s23, %s2534_s26  ;;  %p2542_p3 = scmp.lt.s32.totalorder %s279_s23, %s279_s23 }
  0x32   : > { %p2543_p7 = scmp.lt.s32.totalorder %s2534_s26, %s2534_s26 }
  0x33   : > { %p2537_p2 = pnand %p2535_p1, %p2473_p12 }
  0x34   : > { %2334 = dma.hbm_to_vmem [thread:$0]  (!%p2789_p11), %s3300_s3, 8192, %s289_s22, [#allocation9], %s3289_s29, %s3289_s29, %s3290_s14  }
  0x35   : > { %p2538_p6 = pneg %p2537_p2  ;;  %p2544_p9 = por %p2543_p7, %p2542_p3 }
  0x37   : > { %p2545_p13 = pnand %p2544_p9, %p2538_p6 }
  0x39   : > { %2548 = shalt.err (!%p2545_p13)
}
  0x3a   : > { %s3301_s2 = sld [smem:[#allocation17_spill]]  ;;  %s2560_s28 = scalar_lea.vmem %s305_s25, 8192 }
  0x3b   : > { %p2561_p0 = scmp.ne.s32.totalorder %s305_s25, %s2560_s28  ;;  %p2568_p1 = scmp.lt.s32.totalorder %s305_s25, %s305_s25 }
  0x3c   : > { %p2569_p2 = scmp.lt.s32.totalorder %s2560_s28, %s2560_s28 }
  0x3d   : > { %p2563_p5 = pnand %p2561_p0, %p2473_p12 }
  0x3e   : > { %p2570_p4 = por %p2569_p2, %p2568_p1 }
  0x3f   : > { %p2564_p10 = pneg %p2563_p5 }
  0x40   : > { %2331 = dma.hbm_to_vmem [thread:$0]  (!%p2789_p11), %s3301_s2, 128, %s279_s23, [#allocation6]  }
  0x41   : > { %p2571_p8 = pnand %p2570_p4, %p2564_p10 }
  0x43   : > { %2574 = shalt.err (!%p2571_p8)
}
  0x44   : > { %2337 = dma.hbm_to_vmem [thread:$0]  (!%p2789_p11), %s3281_s5, 8192, %s305_s25, [#allocation9], %s3289_s29, %s3289_s29, %s3290_s14  }
  0x45   : > { %s2834_s21 = sadd.s32 1, %s2675_s12   ;;  %s34_s23 = sadd.s32 1, %s2671_s11 }
  0x46   : > { %s31_s20 = ssub.s32 %s2675_s12, %s2834_s21  ;;  %p41_p8 = scmp.ne.s32.totalorder %s2671_s11, %s2667_s10 }
  0x47   : > { %p32_p4 = scmp.eq.s32.totalorder %s31_s20, 0  ;;  %p42_p12 = scmp.eq.s32.totalorder %s2675_s12, 0 }
  0x48   : > { %p3302_p3 = scmp.eq.s32.totalorder %s2761_s13, 1  ;;  %p2350_p9 = scmp.lt.s32.totalorder %s2675_s12, 2 }
  0x49   : > { %s2843_s24 = scalar_select %p32_p4, %s2671_s11, %s34_s23  }
  0x4a   : > { %p43_p6 = por %p42_p12, %p41_p8  ;;  %p2847_p7 = por %p3302_p3, %p41_p8 }
  0x4b   : > { %s327_s22 = sand.u32 1, %s2671_s11   ;;  %s2079_s25 = sshll.u32 %s2675_s12, 10 }
  0x4c   : > { %s3303_s26 = scalar_select %p2847_p7, 1, 0 }
  0x4d   : > { %s2060_s27 = sshll.u32 %s327_s22, 6  ;;  %s2857_s19 = scalar_lea.hbm %s3276_s0, %s2079_s25 }
  0x4e   : > { %s331_s20 = scalar_lea.vmem [#allocation2], %s2060_s27  ;;  %p2861_p11 = pnand %p2350_p9, %p43_p6 }
  0x4f   : > { %s338_s23 = sshll.u32 %s331_s20, 4  ;;  %s2865_s14 = scalar_lea.sflag [#allocation3], %s327_s22  ;;  %s2859_s23 = int_to_ptr.vmem [resolvable:$true] %s338_s23 }
  0x50   : > { %s2575_s1 = scalar_lea.hbm %s2857_s19, 1024  ;;  %p2577_p0 = pneg %p2861_p11 }
  0x51   : > { %p2576_p13 = scmp.ne.s32.totalorder %s2857_s19, %s2575_s1  ;;  %s2580_s27 = scalar_lea.hbm %s3276_s0, 2048 }
  0x52   : > { %p2581_p1 = scmp.lt.s32.totalorder %s2857_s19, %s3276_s0  ;;  %p2582_p2 = scmp.lt.s32.totalorder %s2580_s27, %s2575_s1 }
  0x53   : > { %p2578_p5 = pnand %p2577_p0, %p2576_p13 }
  0x54   : > { %p2583_p4 = por %p2582_p2, %p2581_p1 }
  0x55   : > { %p2579_p10 = pneg %p2578_p5 }
  0x57   : > { %p2584_p8 = pnand %p2583_p4, %p2579_p10 }
  0x59   : > { %2587 = shalt.err (!%p2584_p8)
}
  0x5a   : > { %s2588_s22 = scalar_lea.vmem %s2859_s23, 1024  ;;  %s2685_s2 = smov [#allocation2]  }
  0x5b   : > { %p2589_p12 = scmp.ne.s32.totalorder %s2859_s23, %s2588_s22  ;;  %s2593_s3 = sshll.u32 %s2685_s2, 4  ;;  %s2594_s3 = int_to_ptr.vmem [resolvable:$false] %s2593_s3 }
  0x5c   : > { %s2595_s25 = scalar_lea.vmem %s2594_s3, 2048  ;;  %p2596_p9 = scmp.lt.s32.totalorder %s2859_s23, %s2594_s3 }
  0x5d   : > { %p2591_p6 = pnand %p2589_p12, %p2577_p0  ;;  %p2597_p13 = scmp.lt.s32.totalorder %s2595_s25, %s2588_s22 }
  0x5f   : > { %p2592_p3 = pneg %p2591_p6  ;;  %p2598_p5 = por %p2597_p13, %p2596_p9 }
  0x61   : > { %p2599_p7 = pnand %p2598_p5, %p2592_p3 }
  0x63   : > { %2602 = shalt.err (!%p2599_p7)
}
  0x64   : > { %s3305_s1 = smov 8   ;;  %s3306_s28 = smov 128  }
  0x65   : > { %2341 = dma.hbm_to_vmem [thread:$0]  (!%p2861_p11), %s2857_s19, 1024, %s2859_s23, %s2865_s14, %s3306_s28, %s3306_s28, %s3305_s1  }
  0x66   : > { %p3307_p0 = scmp.ne.s32.totalorder %s3297_s17, 0 }
  0x67   : > { %s2892_s2 = sand.u32 (!%p3307_p0), 1, %s2667_s10   ;;  %p3308_p7 = scmp.ne.s32.totalorder (!%p3307_p0), %s3295_s15, 0 }
  0x68   : > { %350 = sbr.rel (%p3307_p0) target bundleno = 1007 (0x3ef), region = 56  ;;  %s2064_s3 = sshll.u32 (!%p3307_p0), %s2892_s2, 6 }
  0x69   : > { %s353_s27 = scalar_lea.sflag (!%p3307_p0), [#allocation3], %s2892_s2  ;;  %s2898_s29 = scalar_lea.vmem (!%p3307_p0), [#allocation2], %s2064_s3 }
  0x6d   : > { %2646 = dma.done.wait (%p3308_p7), %s353_s27, 1024  }
  0x6e   : > { %2648 = vsyncadd (%p3308_p7), %s353_s27, 4294966272  ;;  %p3309_p11 = scmp.eq.s32.totalorder %s2761_s13, 0 }
  0x70   : > { %2650 = dma.done.wait (%p3309_p11), [#allocation6], 16512   ;;  %p3310_p10 = pmov %p3309_p11 }
  0x72   : > { %2652 = vsyncadd (%p3310_p10), [#allocation6], 4294950784  ;;  %p3311_p1 = pmov %p3310_p10 }
  0x74   : > { %2654 = dma.done.wait (%p3311_p1), [#allocation9], 16384   ;;  %p3312_p2 = pmov %p3311_p1 }
  0x75   : > { %v2686_v0 = vmov 0.0   ;;  %v538_v1 = vld [vmem:[#allocation5 + $0x3c8] sm:$0xff]  ;;  %v540_v2 = vld [vmem:[#allocation5 + $0x3d8] sm:$0xff]  ;;  %v537_v3 = vld [vmem:[#allocation5 + $0x3c0] sm:$0xff]  ;;  %s3196_s25 = scalar_lea.vmem [#allocation11], %s2064_s3  ;;  %s2080_s1 = sshll.u32 %s2761_s13, 10 }
  0x76   : > { %2656 = vsyncadd (%p3312_p2), [#allocation9], 4294950912  ;;  %651 = vmatprep.mubr.f32.mxu0 %v2686_v0  ;;  %764 = vmatprep.mubr.f32.mxu1 %v2686_v0  ;;  %v539_v4 = vld [vmem:[#allocation5 + $0x3d0] sm:$0xff]  ;;  %v530_v5 = vld [vmem:[#allocation5 + $0x388] sm:$0xff]  ;;  %s1942_s28 = sshll.u32 %s3196_s25, 4  ;;  %s1929_s15 = scalar_lea.sflag [#allocation4], %s2892_s2  ;;  %s3231_s28 = int_to_ptr.vmem [resolvable:$true] %s1942_s28 }
  0x77   : > { %587 = vmatprep.subr.mxu0 %v538_v1  ;;  %700 = vmatprep.subr.mxu1 %v540_v2  ;;  %v532_v6 = vld [vmem:[#allocation5 + $0x398] sm:$0xff]  ;;  %v529_v7 = vld [vmem:[#allocation5 + $0x380] sm:$0xff]  ;;  %v531_v8 = vld [vmem:[#allocation5 + $0x390] sm:$0xff]  ;;  %s2603_s17 = scalar_lea.vmem %s3231_s28, 1024  ;;  %p3313_p8 = scmp.ne.s32.totalorder %s3303_s26, 0 }
  0x78   : > { %588 = vmatpush1.msra.mxu0 %v537_v3  ;;  %701 = vmatpush1.msra.mxu1 %v539_v4  ;;  %v522_v9 = vld [vmem:[#allocation5 + $0x348] sm:$0xff]  ;;  %v524_v10 = vld [vmem:[#allocation5 + $0x358] sm:$0xff]  ;;  %v521_v11 = vld [vmem:[#allocation5 + $0x340] sm:$0xff]  ;;  %p2604_p4 = scmp.ne.s32.totalorder %s3231_s28, %s2603_s17  ;;  %s2687_s13 = smov [#allocation11]  }
  0x79   : > { %589 = vmatprep.subr.mxu0 %v530_v5  ;;  %702 = vmatprep.subr.mxu1 %v532_v6  ;;  %v523_v12 = vld [vmem:[#allocation5 + $0x350] sm:$0xff]  ;;  %v514_v13 = vld [vmem:[#allocation5 + $0x308] sm:$0xff]  ;;  %v516_v14 = vld [vmem:[#allocation5 + $0x318] sm:$0xff]  ;;  %s2607_s14 = sshll.u32 %s2687_s13, 4  ;;  %s2608_s14 = int_to_ptr.vmem [resolvable:$false] %s2607_s14 }
  0x7a   : > { %590 = vmatpush1.msra.mxu0 %v529_v7  ;;  %703 = vmatpush1.msra.mxu1 %v531_v8  ;;  %v513_v15 = vld [vmem:[#allocation5 + $0x300] sm:$0xff]  ;;  %v515_v16 = vld [vmem:[#allocation5 + $0x310] sm:$0xff]  ;;  %v506_v17 = vld [vmem:[#allocation5 + $0x2c8] sm:$0xff]  ;;  %p2605_p12 = pnand %p2604_p4, %p3313_p8  ;;  %s2609_s19 = scalar_lea.vmem %s2608_s14, 2048 }
  0x7b   : > { %591 = vmatprep.subr.mxu0 %v522_v9  ;;  %704 = vmatprep.subr.mxu1 %v524_v10  ;;  %v508_v18 = vld [vmem:[#allocation5 + $0x2d8] sm:$0xff]  ;;  %v505_v19 = vld [vmem:[#allocation5 + $0x2c0] sm:$0xff]  ;;  %v507_v20 = vld [vmem:[#allocation5 + $0x2d0] sm:$0xff]  ;;  %p2610_p3 = scmp.lt.s32.totalorder %s3231_s28, %s2608_s14  ;;  %p2611_p9 = scmp.lt.s32.totalorder %s2609_s19, %s2603_s17 }
  0x7c   : > { %592 = vmatpush1.msra.mxu0 %v521_v11  ;;  %705 = vmatpush1.msra.mxu1 %v523_v12  ;;  %v498_v21 = vld [vmem:[#allocation5 + $0x288] sm:$0xff]  ;;  %v500_v22 = vld [vmem:[#allocation5 + $0x298] sm:$0xff]  ;;  %v497_v23 = vld [vmem:[#allocation5 + $0x280] sm:$0xff]  ;;  %p2606_p6 = pneg %p2605_p12 }
  0x7d   : > { %593 = vmatprep.subr.mxu0 %v514_v13  ;;  %706 = vmatprep.subr.mxu1 %v516_v14  ;;  %v499_v24 = vld [vmem:[#allocation5 + $0x290] sm:$0xff]  ;;  %v490_v25 = vld [vmem:[#allocation5 + $0x248] sm:$0xff]  ;;  %v492_v26 = vld [vmem:[#allocation5 + $0x258] sm:$0xff]  ;;  %p2612_p13 = por %p2611_p9, %p2610_p3 }
  0x7e   : > { %594 = vmatpush1.msra.mxu0 %v513_v15  ;;  %707 = vmatpush1.msra.mxu1 %v515_v16  ;;  %v489_v27 = vld [vmem:[#allocation5 + $0x240] sm:$0xff]  ;;  %v491_v28 = vld [vmem:[#allocation5 + $0x250] sm:$0xff]  ;;  %v482_v29 = vld [vmem:[#allocation5 + $0x208] sm:$0xff] }
  0x7f   : > { %595 = vmatprep.subr.mxu0 %v506_v17  ;;  %708 = vmatprep.subr.mxu1 %v508_v18  ;;  %v484_v30 = vld [vmem:[#allocation5 + $0x218] sm:$0xff]  ;;  %v481_v31 = vld [vmem:[#allocation5 + $0x200] sm:$0xff]  ;;  %v483_v32 = vld [vmem:[#allocation5 + $0x210] sm:$0xff]  ;;  %p2613_p5 = pnand %p2612_p13, %p2606_p6 }
  0x80   : > { %596 = vmatpush1.msra.mxu0 %v505_v19  ;;  %709 = vmatpush1.msra.mxu1 %v507_v20  ;;  %v474_v33 = vld [vmem:[#allocation5 + $0x1c8] sm:$0xff]  ;;  %v476_v34 = vld [vmem:[#allocation5 + $0x1d8] sm:$0xff]  ;;  %v473_v35 = vld [vmem:[#allocation5 + $0x1c0] sm:$0xff] }
  0x81   : > { %597 = vmatprep.subr.mxu0 %v498_v21  ;;  %710 = vmatprep.subr.mxu1 %v500_v22  ;;  %v475_v36 = vld [vmem:[#allocation5 + $0x1d0] sm:$0xff]  ;;  %v466_v37 = vld [vmem:[#allocation5 + $0x188] sm:$0xff]  ;;  %v468_v38 = vld [vmem:[#allocation5 + $0x198] sm:$0xff] }
  0x82   : > { %598 = vmatpush1.msra.mxu0 %v497_v23  ;;  %711 = vmatpush1.msra.mxu1 %v499_v24  ;;  %v465_v39 = vld [vmem:[#allocation5 + $0x180] sm:$0xff]  ;;  %v467_v40 = vld [vmem:[#allocation5 + $0x190] sm:$0xff]  ;;  %v458_v41 = vld [vmem:[#allocation5 + $0x148] sm:$0xff] }
  0x83   : > { %599 = vmatprep.subr.mxu0 %v490_v25  ;;  %712 = vmatprep.subr.mxu1 %v492_v26  ;;  %v460_v42 = vld [vmem:[#allocation5 + $0x158] sm:$0xff]  ;;  %v457_v43 = vld [vmem:[#allocation5 + $0x140] sm:$0xff]  ;;  %v459_v44 = vld [vmem:[#allocation5 + $0x150] sm:$0xff] }
  0x84   : > { %600 = vmatpush1.msra.mxu0 %v489_v27  ;;  %713 = vmatpush1.msra.mxu1 %v491_v28  ;;  %v450_v45 = vld [vmem:[#allocation5 + $0x108] sm:$0xff]  ;;  %v452_v46 = vld [vmem:[#allocation5 + $0x118] sm:$0xff]  ;;  %v449_v47 = vld [vmem:[#allocation5 + $0x100] sm:$0xff] }
  0x85   : > { %601 = vmatprep.subr.mxu0 %v482_v29  ;;  %714 = vmatprep.subr.mxu1 %v484_v30  ;;  %v451_v48 = vld [vmem:[#allocation5 + $0x110] sm:$0xff]  ;;  %v442_v49 = vld [vmem:[#allocation5 + $0xc8] sm:$0xff]  ;;  %v444_v50 = vld [vmem:[#allocation5 + $0xd8] sm:$0xff] }
  0x86   : > { %602 = vmatpush1.msra.mxu0 %v481_v31  ;;  %715 = vmatpush1.msra.mxu1 %v483_v32  ;;  %v441_v51 = vld [vmem:[#allocation5 + $0xc0] sm:$0xff]  ;;  %v443_v52 = vld [vmem:[#allocation5 + $0xd0] sm:$0xff]  ;;  %v434_v53 = vld [vmem:[#allocation5 + $0x88] sm:$0xff] }
  0x87   : > { %603 = vmatprep.subr.mxu0 %v474_v33  ;;  %716 = vmatprep.subr.mxu1 %v476_v34  ;;  %v436_v54 = vld [vmem:[#allocation5 + $0x98] sm:$0xff]  ;;  %v433_v55 = vld [vmem:[#allocation5 + $0x80] sm:$0xff]  ;;  %v435_v56 = vld [vmem:[#allocation5 + $0x90] sm:$0xff] }
  0x88   : > { %604 = vmatpush1.msra.mxu0 %v473_v35  ;;  %717 = vmatpush1.msra.mxu1 %v475_v36  ;;  %v426_v57 = vld [vmem:[#allocation5 + $0x48] sm:$0xff]  ;;  %v428_v58 = vld [vmem:[#allocation5 + $0x58] sm:$0xff]  ;;  %v425_v59 = vld [vmem:[#allocation5 + $0x40] sm:$0xff] }
  0x89   : > { %605 = vmatprep.subr.mxu0 %v466_v37  ;;  %718 = vmatprep.subr.mxu1 %v468_v38  ;;  %v427_v60 = vld [vmem:[#allocation5 + $0x50] sm:$0xff]  ;;  %v418_v61 = vld [vmem:[#allocation5 + $0x8] sm:$0xff]  ;;  %v420_v62 = vld [vmem:[#allocation5 + $0x18] sm:$0xff] }
  0x8a   : > { %606 = vmatpush1.msra.mxu0 %v465_v39  ;;  %719 = vmatpush1.msra.mxu1 %v467_v40  ;;  %v417_v63 = vld [vmem:[#allocation5] sm:$0xff]  ;;  %v419_v1 = vld [vmem:[#allocation5 + $0x10] sm:$0xff]  ;;  %v542_v3 = vld [vmem:[#allocation5 + $0x3e8] sm:$0xff] }
  0x8b   : > { %607 = vmatprep.subr.mxu0 %v458_v41  ;;  %720 = vmatprep.subr.mxu1 %v460_v42  ;;  %v2915_v2 = vld [vmem:[%s2898_s29] sm:$0xff]  ;;  %v544_v4 = vld [vmem:[#allocation5 + $0x3f8] sm:$0xff]  ;;  %v543_v6 = vld [vmem:[#allocation5 + $0x3f0] sm:$0xff] }
  0x8c   : > { %608 = vmatpush1.msra.mxu0 %v457_v43  ;;  %721 = vmatpush1.msra.mxu1 %v459_v44  ;;  %v541_v5 = vld [vmem:[#allocation5 + $0x3e0] sm:$0xff]  ;;  %v534_v7 = vld [vmem:[#allocation5 + $0x3a8] sm:$0xff]  ;;  %v536_v8 = vld [vmem:[#allocation5 + $0x3b8] sm:$0xff] }
  0x8d   : > { %609 = vmatprep.subr.mxu0 %v450_v45  ;;  %722 = vmatprep.subr.mxu1 %v452_v46  ;;  %v533_v9 = vld [vmem:[#allocation5 + $0x3a0] sm:$0xff]  ;;  %v535_v10 = vld [vmem:[#allocation5 + $0x3b0] sm:$0xff]  ;;  %v2920_v11 = vld [vmem:[%s2898_s29 + $0x8] sm:$0xff] }
  0x8e   : > { %610 = vmatpush1.msra.mxu0 %v449_v47  ;;  %723 = vmatpush1.msra.mxu1 %v451_v48  ;;  %v526_v12 = vld [vmem:[#allocation5 + $0x368] sm:$0xff]  ;;  %v528_v13 = vld [vmem:[#allocation5 + $0x378] sm:$0xff]  ;;  %v525_v14 = vld [vmem:[#allocation5 + $0x360] sm:$0xff] }
  0x8f   : > { %611 = vmatprep.subr.mxu0 %v442_v49  ;;  %724 = vmatprep.subr.mxu1 %v444_v50  ;;  %v527_v15 = vld [vmem:[#allocation5 + $0x370] sm:$0xff]  ;;  %v518_v16 = vld [vmem:[#allocation5 + $0x328] sm:$0xff]  ;;  %v520_v17 = vld [vmem:[#allocation5 + $0x338] sm:$0xff] }
  0x90   : > { %612 = vmatpush1.msra.mxu0 %v441_v51  ;;  %725 = vmatpush1.msra.mxu1 %v443_v52  ;;  %v517_v18 = vld [vmem:[#allocation5 + $0x320] sm:$0xff]  ;;  %v519_v19 = vld [vmem:[#allocation5 + $0x330] sm:$0xff]  ;;  %v510_v21 = vld [vmem:[#allocation5 + $0x2e8] sm:$0xff] }
  0x91   : > { %613 = vmatprep.subr.mxu0 %v434_v53  ;;  %726 = vmatprep.subr.mxu1 %v436_v54  ;;  %v2927_v20 = vld [vmem:[%s2898_s29 + $0x10] sm:$0xff]  ;;  %v512_v22 = vld [vmem:[#allocation5 + $0x2f8] sm:$0xff]  ;;  %v509_v23 = vld [vmem:[#allocation5 + $0x2e0] sm:$0xff] }
  0x92   : > { %614 = vmatpush1.msra.mxu0 %v433_v55  ;;  %727 = vmatpush1.msra.mxu1 %v435_v56  ;;  %v511_v24 = vld [vmem:[#allocation5 + $0x2f0] sm:$0xff]  ;;  %v502_v25 = vld [vmem:[#allocation5 + $0x2a8] sm:$0xff]  ;;  %v504_v26 = vld [vmem:[#allocation5 + $0x2b8] sm:$0xff] }
  0x93   : > { %615 = vmatprep.subr.mxu0 %v426_v57  ;;  %728 = vmatprep.subr.mxu1 %v428_v58  ;;  %v501_v27 = vld [vmem:[#allocation5 + $0x2a0] sm:$0xff]  ;;  %v503_v28 = vld [vmem:[#allocation5 + $0x2b0] sm:$0xff]  ;;  %v2934_v29 = vld [vmem:[%s2898_s29 + $0x18] sm:$0xff] }
  0x94   : > { %616 = vmatpush1.msra.mxu0 %v425_v59  ;;  %729 = vmatpush1.msra.mxu1 %v427_v60  ;;  %v494_v30 = vld [vmem:[#allocation5 + $0x268] sm:$0xff]  ;;  %v496_v31 = vld [vmem:[#allocation5 + $0x278] sm:$0xff]  ;;  %v493_v32 = vld [vmem:[#allocation5 + $0x260] sm:$0xff] }
  0x95   : > { %617 = vmatprep.subr.mxu0 %v418_v61  ;;  %730 = vmatprep.subr.mxu1 %v420_v62  ;;  %v495_v33 = vld [vmem:[#allocation5 + $0x270] sm:$0xff]  ;;  %v486_v34 = vld [vmem:[#allocation5 + $0x228] sm:$0xff]  ;;  %v488_v35 = vld [vmem:[#allocation5 + $0x238] sm:$0xff] }
  0x96   : > { %618 = vmatpush1.msra.mxu0 %v417_v63  ;;  %731 = vmatpush1.msra.mxu1 %v419_v1  ;;  %v485_v36 = vld [vmem:[#allocation5 + $0x220] sm:$0xff]  ;;  %v487_v37 = vld [vmem:[#allocation5 + $0x230] sm:$0xff]  ;;  %v478_v39 = vld [vmem:[#allocation5 + $0x1e8] sm:$0xff] }
  0x97   : > { %652 = vmatmul.mubr.f32.vlgmr.msra.gmra.mxu0 %v2915_v2  ;;  %765 = vmatmul.mubr.f32.vlgmr.msra.gmra.mxu1 %v2915_v2  ;;  %v2941_v38 = vld [vmem:[%s2898_s29 + $0x20] sm:$0xff]  ;;  %v480_v40 = vld [vmem:[#allocation5 + $0x1f8] sm:$0xff]  ;;  %v479_v42 = vld [vmem:[#allocation5 + $0x1f0] sm:$0xff] }
  0x98   : > { %813 = vmatprep.subr.mxu0 %v542_v3  ;;  %926 = vmatprep.subr.mxu1 %v544_v4  ;;  %v477_v41 = vld [vmem:[#allocation5 + $0x1e0] sm:$0xff]  ;;  %v470_v43 = vld [vmem:[#allocation5 + $0x1a8] sm:$0xff]  ;;  %v472_v44 = vld [vmem:[#allocation5 + $0x1b8] sm:$0xff] }
  0x99   : > { %814 = vmatpush1.msra.mxu0 %v541_v5  ;;  %927 = vmatpush1.msra.mxu1 %v543_v6  ;;  %v469_v45 = vld [vmem:[#allocation5 + $0x1a0] sm:$0xff]  ;;  %v471_v46 = vld [vmem:[#allocation5 + $0x1b0] sm:$0xff]  ;;  %v2948_v47 = vld [vmem:[%s2898_s29 + $0x28] sm:$0xff] }
  0x9a   : > { %815 = vmatprep.subr.mxu0 %v534_v7  ;;  %928 = vmatprep.subr.mxu1 %v536_v8  ;;  %v462_v48 = vld [vmem:[#allocation5 + $0x168] sm:$0xff]  ;;  %v464_v49 = vld [vmem:[#allocation5 + $0x178] sm:$0xff]  ;;  %v461_v50 = vld [vmem:[#allocation5 + $0x160] sm:$0xff] }
  0x9b   : > { %657 = vmatprep.mubr.f32.mxu0 %v2686_v0  ;;  %770 = vmatprep.mubr.f32.mxu1 %v2686_v0  ;;  %v463_v51 = vld [vmem:[#allocation5 + $0x170] sm:$0xff]  ;;  %v454_v52 = vld [vmem:[#allocation5 + $0x128] sm:$0xff]  ;;  %v456_v53 = vld [vmem:[#allocation5 + $0x138] sm:$0xff] }
  0x9c   : > { %816 = vmatpush1.msra.mxu0 %v533_v9  ;;  %929 = vmatpush1.msra.mxu1 %v535_v10  ;;  %v453_v54 = vld [vmem:[#allocation5 + $0x120] sm:$0xff]  ;;  %v455_v55 = vld [vmem:[#allocation5 + $0x130] sm:$0xff]  ;;  %v446_v57 = vld [vmem:[#allocation5 + $0xe8] sm:$0xff] }
  0x9d   : > { %658 = vmatmul.mubr.f32.gmra.mxu0 %v2920_v11  ;;  %771 = vmatmul.mubr.f32.gmra.mxu1 %v2920_v11  ;;  %v2955_v56 = vld [vmem:[%s2898_s29 + $0x30] sm:$0xff]  ;;  %v448_v58 = vld [vmem:[#allocation5 + $0xf8] sm:$0xff]  ;;  %v445_v59 = vld [vmem:[#allocation5 + $0xe0] sm:$0xff] }
  0x9e   : > { %817 = vmatprep.subr.mxu0 %v526_v12  ;;  %930 = vmatprep.subr.mxu1 %v528_v13  ;;  %v447_v60 = vld [vmem:[#allocation5 + $0xf0] sm:$0xff]  ;;  %v438_v61 = vld [vmem:[#allocation5 + $0xa8] sm:$0xff]  ;;  %v440_v62 = vld [vmem:[#allocation5 + $0xb8] sm:$0xff] }
  0x9f   : > { %818 = vmatpush1.msra.mxu0 %v525_v14  ;;  %931 = vmatpush1.msra.mxu1 %v527_v15  ;;  %v437_v63 = vld [vmem:[#allocation5 + $0xa0] sm:$0xff]  ;;  %v439_v1 = vld [vmem:[#allocation5 + $0xb0] sm:$0xff]  ;;  %v2962_v3 = vld [vmem:[%s2898_s29 + $0x38] sm:$0xff] }
  0xa0   : > { %819 = vmatprep.subr.mxu0 %v518_v16  ;;  %932 = vmatprep.subr.mxu1 %v520_v17  ;;  %v430_v4 = vld [vmem:[#allocation5 + $0x68] sm:$0xff]  ;;  %v432_v5 = vld [vmem:[#allocation5 + $0x78] sm:$0xff]  ;;  %v429_v6 = vld [vmem:[#allocation5 + $0x60] sm:$0xff] }
  0xa1   : > { %663 = vmatprep.mubr.f32.mxu0 %v2686_v0  ;;  %776 = vmatprep.mubr.f32.mxu1 %v2686_v0  ;;  %v431_v7 = vld [vmem:[#allocation5 + $0x70] sm:$0xff]  ;;  %v422_v8 = vld [vmem:[#allocation5 + $0x28] sm:$0xff]  ;;  %v424_v9 = vld [vmem:[#allocation5 + $0x38] sm:$0xff] }
  0xa2   : > { %820 = vmatpush1.msra.mxu0 %v517_v18  ;;  %933 = vmatpush1.msra.mxu1 %v519_v19  ;;  %v421_v10 = vld [vmem:[#allocation5 + $0x20] sm:$0xff]  ;;  %v423_v12 = vld [vmem:[#allocation5 + $0x30] sm:$0xff]  ;;  %v1133_v17 = vld [vmem:[#allocation8 + $0xf0] sm:$0xff] }
  0xa3   : > { %664 = vmatmul.mubr.f32.gmra.mxu0 %v2927_v20  ;;  %777 = vmatmul.mubr.f32.gmra.mxu1 %v2927_v20  ;;  %v1134_v13 = vld [vmem:[#allocation8 + $0xf8] sm:$0xff]  ;;  %v1165_v18 = vld [vmem:[#allocation8 + $0x1f0] sm:$0xff] }
  0xa4   : > { %821 = vmatprep.subr.mxu0 %v510_v21  ;;  %934 = vmatprep.subr.mxu1 %v512_v22  ;;  %v1166_v14 = vld [vmem:[#allocation8 + $0x1f8] sm:$0xff]  ;;  %v1117_v19 = vld [vmem:[#allocation8 + $0x70] sm:$0xff]  ;;  %v1164_v22 = vld [vmem:[#allocation8 + $0x1e8] sm:$0xff] }
  0xa5   : > { %822 = vmatpush1.msra.mxu0 %v509_v23  ;;  %935 = vmatpush1.msra.mxu1 %v511_v24  ;;  %v1118_v15 = vld [vmem:[#allocation8 + $0x78] sm:$0xff]  ;;  %v1149_v21 = vld [vmem:[#allocation8 + $0x170] sm:$0xff]  ;;  %v1116_v23 = vld [vmem:[#allocation8 + $0x68] sm:$0xff] }
  0xa6   : > { %823 = vmatprep.subr.mxu0 %v502_v25  ;;  %936 = vmatprep.subr.mxu1 %v504_v26  ;;  %v1150_v16 = vld [vmem:[#allocation8 + $0x178] sm:$0xff]  ;;  %v1148_v24 = vld [vmem:[#allocation8 + $0x168] sm:$0xff]  ;;  %v1163_v25 = vld [vmem:[#allocation8 + $0x1e0] sm:$0xff] }
  0xa7   : > { %669 = vmatprep.mubr.f32.mxu0 %v2686_v0  ;;  %782 = vmatprep.mubr.f32.mxu1 %v2686_v0  ;;  %v1115_v26 = vld [vmem:[#allocation8 + $0x60] sm:$0xff] }
  0xa8   : > { %824 = vmatpush1.msra.mxu0 %v501_v27  ;;  %937 = vmatpush1.msra.mxu1 %v503_v28  ;;  %v1147_v27 = vld [vmem:[#allocation8 + $0x160] sm:$0xff]  ;;  %v1162_v28 = vld [vmem:[#allocation8 + $0x1d8] sm:$0xff] }
  0xa9   : > { %670 = vmatmul.mubr.f32.gmra.mxu0 %v2934_v29  ;;  %783 = vmatmul.mubr.f32.gmra.mxu1 %v2934_v29 }
  0xaa   : > { %825 = vmatprep.subr.mxu0 %v494_v30  ;;  %938 = vmatprep.subr.mxu1 %v496_v31  ;;  %v1114_v30 = vld [vmem:[#allocation8 + $0x58] sm:$0xff] }
  0xab   : > { %826 = vmatpush1.msra.mxu0 %v493_v32  ;;  %939 = vmatpush1.msra.mxu1 %v495_v33  ;;  %v1146_v31 = vld [vmem:[#allocation8 + $0x158] sm:$0xff]  ;;  %v1161_v32 = vld [vmem:[#allocation8 + $0x1d0] sm:$0xff] }
  0xac   : > { %827 = vmatprep.subr.mxu0 %v486_v34  ;;  %940 = vmatprep.subr.mxu1 %v488_v35  ;;  %v1113_v33 = vld [vmem:[#allocation8 + $0x50] sm:$0xff]  ;;  %v1128_v35 = vld [vmem:[#allocation8 + $0xc8] sm:$0xff] }
  0xad   : > { %675 = vmatprep.mubr.f32.mxu0 %v2686_v0  ;;  %788 = vmatprep.mubr.f32.mxu1 %v2686_v0  ;;  %v1145_v34 = vld [vmem:[#allocation8 + $0x150] sm:$0xff] }
  0xae   : > { %828 = vmatpush1.msra.mxu0 %v485_v36  ;;  %941 = vmatpush1.msra.mxu1 %v487_v37  ;;  %v1160_v36 = vld [vmem:[#allocation8 + $0x1c8] sm:$0xff] }
  0xaf   : > { %676 = vmatmul.mubr.f32.gmra.mxu0 %v2941_v38  ;;  %789 = vmatmul.mubr.f32.gmra.mxu1 %v2941_v38  ;;  %v1112_v37 = vld [vmem:[#allocation8 + $0x48] sm:$0xff] }
  0xb0   : > { %829 = vmatprep.subr.mxu0 %v478_v39  ;;  %942 = vmatprep.subr.mxu1 %v480_v40  ;;  %v1127_v39 = vld [vmem:[#allocation8 + $0xc0] sm:$0xff] }
  0xb1   : > { %830 = vmatpush1.msra.mxu0 %v477_v41  ;;  %943 = vmatpush1.msra.mxu1 %v479_v42  ;;  %v1159_v40 = vld [vmem:[#allocation8 + $0x1c0] sm:$0xff] }
  0xb2   : > { %831 = vmatprep.subr.mxu0 %v470_v43  ;;  %944 = vmatprep.subr.mxu1 %v472_v44  ;;  %v1111_v41 = vld [vmem:[#allocation8 + $0x40] sm:$0xff]  ;;  %v1126_v43 = vld [vmem:[#allocation8 + $0xb8] sm:$0xff] }
  0xb3   : > { %681 = vmatprep.mubr.f32.mxu0 %v2686_v0  ;;  %794 = vmatprep.mubr.f32.mxu1 %v2686_v0  ;;  %v1143_v42 = vld [vmem:[#allocation8 + $0x140] sm:$0xff]  ;;  %v1158_v44 = vld [vmem:[#allocation8 + $0x1b8] sm:$0xff] }
  0xb4   : > { %832 = vmatpush1.msra.mxu0 %v469_v45  ;;  %945 = vmatpush1.msra.mxu1 %v471_v46  ;;  %v1110_v45 = vld [vmem:[#allocation8 + $0x38] sm:$0xff] }
  0xb5   : > { %682 = vmatmul.mubr.f32.gmra.mxu0 %v2948_v47  ;;  %795 = vmatmul.mubr.f32.gmra.mxu1 %v2948_v47  ;;  %v1142_v46 = vld [vmem:[#allocation8 + $0x138] sm:$0xff] }
  0xb6   : > { %833 = vmatprep.subr.mxu0 %v462_v48  ;;  %946 = vmatprep.subr.mxu1 %v464_v49  ;;  %v1109_v48 = vld [vmem:[#allocation8 + $0x30] sm:$0xff] }
  0xb7   : > { %834 = vmatpush1.msra.mxu0 %v461_v50  ;;  %947 = vmatpush1.msra.mxu1 %v463_v51  ;;  %v1141_v49 = vld [vmem:[#allocation8 + $0x130] sm:$0xff]  ;;  %v1124_v50 = vld [vmem:[#allocation8 + $0xa8] sm:$0xff] }
  0xb8   : > { %835 = vmatprep.subr.mxu0 %v454_v52  ;;  %948 = vmatprep.subr.mxu1 %v456_v53  ;;  %v1156_v51 = vld [vmem:[#allocation8 + $0x1a8] sm:$0xff] }
  0xb9   : > { %687 = vmatprep.mubr.f32.mxu0 %v2686_v0  ;;  %800 = vmatprep.mubr.f32.mxu1 %v2686_v0  ;;  %v1108_v52 = vld [vmem:[#allocation8 + $0x28] sm:$0xff] }
  0xba   : > { %836 = vmatpush1.msra.mxu0 %v453_v54  ;;  %949 = vmatpush1.msra.mxu1 %v455_v55  ;;  %v1140_v53 = vld [vmem:[#allocation8 + $0x128] sm:$0xff]  ;;  %v1123_v54 = vld [vmem:[#allocation8 + $0xa0] sm:$0xff] }
  0xbb   : > { %688 = vmatmul.mubr.f32.gmra.mxu0 %v2955_v56  ;;  %801 = vmatmul.mubr.f32.gmra.mxu1 %v2955_v56  ;;  %v1155_v55 = vld [vmem:[#allocation8 + $0x1a0] sm:$0xff] }
  0xbc   : > { %837 = vmatprep.subr.mxu0 %v446_v57  ;;  %950 = vmatprep.subr.mxu1 %v448_v58  ;;  %v1139_v57 = vld [vmem:[#allocation8 + $0x120] sm:$0xff]  ;;  %v1122_v58 = vld [vmem:[#allocation8 + $0x98] sm:$0xff] }
  0xbd   : > { %838 = vmatpush1.msra.mxu0 %v445_v59  ;;  %951 = vmatpush1.msra.mxu1 %v447_v60  ;;  %v1154_v59 = vld [vmem:[#allocation8 + $0x198] sm:$0xff] }
  0xbe   : > { %839 = vmatprep.subr.mxu0 %v438_v61  ;;  %952 = vmatprep.subr.mxu1 %v440_v62  ;;  %v1106_v60 = vld [vmem:[#allocation8 + $0x18] sm:$0xff]  ;;  %v1121_v62 = vld [vmem:[#allocation8 + $0x90] sm:$0xff] }
  0xbf   : > { %693 = vmatprep.mubr.f32.mxu0 %v2686_v0  ;;  %806 = vmatprep.mubr.f32.mxu1 %v2686_v0  ;;  %v1138_v61 = vld [vmem:[#allocation8 + $0x118] sm:$0xff] }
  0xc0   : > { %840 = vmatpush1.msra.mxu0 %v437_v63  ;;  %953 = vmatpush1.msra.mxu1 %v439_v1  ;;  %v1153_v63 = vld [vmem:[#allocation8 + $0x190] sm:$0xff] }
  0xc1   : > { %694 = vmatmul.mubr.f32.gmra.mxu0 %v2962_v3  ;;  %807 = vmatmul.mubr.f32.gmra.mxu1 %v2962_v3  ;;  %v1105_v1 = vld [vmem:[#allocation8 + $0x10] sm:$0xff] }
  0xc2   : > { %841 = vmatprep.subr.mxu0 %v430_v4  ;;  %954 = vmatprep.subr.mxu1 %v432_v5  ;;  %v1120_v4 = vld [vmem:[#allocation8 + $0x88] sm:$0xff] }
  0xc3   : > { %842 = vmatpush1.msra.mxu0 %v429_v6  ;;  %955 = vmatpush1.msra.mxu1 %v431_v7  ;;  %v1152_v5 = vld [vmem:[#allocation8 + $0x188] sm:$0xff] }
  0xc4   : > { %843 = vmatprep.subr.mxu0 %v422_v8  ;;  %956 = vmatprep.subr.mxu1 %v424_v9  ;;  %v1104_v6 = vld [vmem:[#allocation8 + $0x8] sm:$0xff]  ;;  %v1119_v8 = vld [vmem:[#allocation8 + $0x80] sm:$0xff] }
  0xc5   : > { %844 = vmatpush1.msra.mxu0 %v421_v10  ;;  %877 = vmatprep.mubr.f32.mxu0 %v2686_v0  ;;  %v1136_v7 = vld [vmem:[#allocation8 + $0x108] sm:$0xff]  ;;  %v1151_v9 = vld [vmem:[#allocation8 + $0x180] sm:$0xff] }
  0xc6   : > { %957 = vmatpush1.msra.mxu1 %v423_v12  ;;  %990 = vmatprep.mubr.f32.mxu1 %v2686_v0  ;;  %v1103_v10 = vld [vmem:[#allocation8] sm:$0xff] }
  0xc7   : > { %878 = vmatmul.mubr.f32.vlgmr.msra.gmra.mxu0 %v2915_v2  ;;  %991 = vmatmul.mubr.f32.vlgmr.msra.gmra.mxu1 %v2915_v2  ;;  %v1132_v2 = vld [vmem:[#allocation8 + $0xe8] sm:$0xff]  ;;  %v1135_v12 = vld [vmem:[#allocation8 + $0x100] sm:$0xff] }
  0xc8   : > { %883 = vmatprep.mubr.f32.mxu0 %v2686_v0  ;;  %996 = vmatprep.mubr.f32.mxu1 %v2686_v0 }
  0xc9   : > { %2081 = vmatprep.subr.mxu0 %v1134_v13  ;;  %2137 = vmatprep.subr.mxu1 %v1166_v14  ;;  %v1415_v13 = vld [vmem:[#allocation10 + $0xf8] sm:$0xff] }
  0xca   : > { %2082 = vmatpush3.msra.mxu0 %v1118_v15  ;;  %2138 = vmatpush3.msra.mxu1 %v1150_v16  ;;  %v1447_v14 = vld [vmem:[#allocation10 + $0x1f8] sm:$0xff]  ;;  %v547_v15 = vlaneseq }
  0xcb   : > { %884 = vmatmul.mubr.f32.gmra.mxu0 %v2920_v11  ;;  %997 = vmatmul.mubr.f32.gmra.mxu1 %v2920_v11  ;;  %v1131_v11 = vld [vmem:[#allocation8 + $0xe0] sm:$0xff] }
  0xcc   : > { %889 = vmatprep.mubr.f32.mxu0 %v2686_v0  ;;  %1002 = vmatprep.mubr.f32.mxu1 %v2686_v0  ;;  %v3000_v16 = vshrl.u32 %v547_v15, 7 }
  0xcd   : > { %2083 = vmatprep.subr.mxu0 %v1133_v17  ;;  %2139 = vmatprep.subr.mxu1 %v1165_v18 }
  0xce   : > { %2084 = vmatpush3.msra.mxu0 %v1117_v19  ;;  %2140 = vmatpush3.msra.mxu1 %v1149_v21  ;;  %v557_v17 = vsub.s32 2, %v3000_v16  ;;  %v549_v18 = vsub.s32 0, %v3000_v16  ;;  %v3004_v19 = vld [vmem:[#allocation7] sm:$0xff]  ;;  %v553_v21 = vsub.s32 1, %v3000_v16 }
  0xcf   : > { %890 = vmatmul.mubr.f32.gmra.mxu0 %v2927_v20  ;;  %1003 = vmatmul.mubr.f32.gmra.mxu1 %v2927_v20  ;;  %v1130_v20 = vld [vmem:[#allocation8 + $0xd8] sm:$0xff] }
  0xd0   : > { %895 = vmatprep.mubr.f32.mxu0 %v2686_v0  ;;  %1008 = vmatprep.mubr.f32.mxu1 %v2686_v0 }
  0xd1   : > { %2085 = vmatprep.subr.mxu0 %v1132_v2  ;;  %2141 = vmatprep.subr.mxu1 %v1164_v22  ;;  %v561_v2 = vsub.s32 3, %v3000_v16  ;;  %v3009_v22 = vrot.slane %v3004_v19, %v557_v17  ;;  %v1395_v17 = vld [vmem:[#allocation10 + $0x58] sm:$0xff] }
  0xd2   : > { %2086 = vmatpush3.msra.mxu0 %v1116_v23  ;;  %2142 = vmatpush3.msra.mxu1 %v1148_v24  ;;  %v3012_v23 = vrot.slane %v3004_v19, %v549_v18  ;;  %v3015_v24 = vrot.slane %v3004_v19, %v553_v21  ;;  %v1427_v18 = vld [vmem:[#allocation10 + $0x158] sm:$0xff] }
  0xd3   : > { %896 = vmatmul.mubr.f32.gmra.mxu0 %v2934_v29  ;;  %1009 = vmatmul.mubr.f32.gmra.mxu1 %v2934_v29  ;;  %v1129_v29 = vld [vmem:[#allocation8 + $0xd0] sm:$0xff] }
  0xd4   : > { %901 = vmatprep.mubr.f32.mxu0 %v2686_v0  ;;  %1014 = vmatprep.mubr.f32.mxu1 %v2686_v0 }
  0xd5   : > { %2087 = vmatprep.subr.mxu0 %v1131_v11  ;;  %2143 = vmatprep.subr.mxu1 %v1163_v25  ;;  %v3018_v11 = vrot.slane %v3004_v19, %v561_v2  ;;  %v1410_v2 = vld [vmem:[#allocation10 + $0xd0] sm:$0xff] }
  0xd6   : > { %2088 = vmatpush3.msra.mxu0 %v1115_v26  ;;  %2144 = vmatpush3.msra.mxu1 %v1147_v27 }
  0xd7   : > { %902 = vmatmul.mubr.f32.gmra.mxu0 %v2941_v38  ;;  %1015 = vmatmul.mubr.f32.gmra.mxu1 %v2941_v38  ;;  %v1144_v38 = vld [vmem:[#allocation8 + $0x148] sm:$0xff] }
  0xd8   : > { %907 = vmatprep.mubr.f32.mxu0 %v2686_v0  ;;  %1020 = vmatprep.mubr.f32.mxu1 %v2686_v0 }
  0xd9   : > { %2089 = vmatprep.subr.mxu0 %v1130_v20  ;;  %2145 = vmatprep.subr.mxu1 %v1162_v28 }
  0xda   : > { %2090 = vmatpush3.msra.mxu0 %v1114_v30  ;;  %2146 = vmatpush3.msra.mxu1 %v1146_v31 }
  0xdb   : > { %908 = vmatmul.mubr.f32.gmra.mxu0 %v2948_v47  ;;  %1021 = vmatmul.mubr.f32.gmra.mxu1 %v2948_v47  ;;  %v1157_v47 = vld [vmem:[#allocation8 + $0x1b0] sm:$0xff] }
  0xdc   : > { %913 = vmatprep.mubr.f32.mxu0 %v2686_v0  ;;  %1026 = vmatprep.mubr.f32.mxu1 %v2686_v0 }
  0xdd   : > { %2091 = vmatprep.subr.mxu0 %v1129_v29  ;;  %2147 = vmatprep.subr.mxu1 %v1161_v32 }
  0xde   : > { %2092 = vmatpush3.msra.mxu0 %v1113_v33  ;;  %2148 = vmatpush3.msra.mxu1 %v1145_v34 }
  0xdf   : > { %914 = vmatmul.mubr.f32.gmra.mxu0 %v2955_v56  ;;  %1027 = vmatmul.mubr.f32.gmra.mxu1 %v2955_v56  ;;  %v1107_v56 = vld [vmem:[#allocation8 + $0x20] sm:$0xff] }
  0xe0   : > { %919 = vmatprep.mubr.f32.mxu0 %v2686_v0  ;;  %1032 = vmatprep.mubr.f32.mxu1 %v2686_v0  ;;  %v1125_v0 = vld [vmem:[#allocation8 + $0xb0] sm:$0xff] }
  0xe1   : > { %2093 = vmatprep.subr.mxu0 %v1128_v35  ;;  %2149 = vmatprep.subr.mxu1 %v1160_v36 }
  0xe2   : > { %2094 = vmatpush3.msra.mxu0 %v1112_v37  ;;  %2150 = vmatpush3.msra.mxu1 %v1144_v38  ;;  %v1399_v38 = vld [vmem:[#allocation10 + $0x78] sm:$0xff] }
  0xe3   : > { %920 = vmatmul.mubr.f32.gmra.mxu0 %v2962_v3  ;;  %1033 = vmatmul.mubr.f32.gmra.mxu1 %v2962_v3  ;;  %v1137_v3 = vld [vmem:[#allocation8 + $0x110] sm:$0xff] }
  0xe4   : > { %2095 = vmatprep.subr.mxu0 %v1127_v39  ;;  %2151 = vmatprep.subr.mxu1 %v1159_v40  ;;  %v1431_v39 = vld [vmem:[#allocation10 + $0x178] sm:$0xff] }
  0xe5   : > { %2096 = vmatpush3.msra.mxu0 %v1111_v41  ;;  %2152 = vmatpush3.msra.mxu1 %v1143_v42  ;;  %v1414_v41 = vld [vmem:[#allocation10 + $0xf0] sm:$0xff] }
  0xe6   : > { %2097 = vmatprep.subr.mxu0 %v1126_v43  ;;  %2153 = vmatprep.subr.mxu1 %v1158_v44  ;;  %v1446_v42 = vld [vmem:[#allocation10 + $0x1f0] sm:$0xff] }
  0xe7   : > { %2098 = vmatpush3.msra.mxu0 %v1110_v45  ;;  %2154 = vmatpush3.msra.mxu1 %v1142_v46  ;;  %v1398_v46 = vld [vmem:[#allocation10 + $0x70] sm:$0xff] }
  0xe8   : > { %2099 = vmatprep.subr.mxu0 %v1125_v0  ;;  %2155 = vmatprep.subr.mxu1 %v1157_v47  ;;  %v1430_v0 = vld [vmem:[#allocation10 + $0x170] sm:$0xff] }
  0xe9   : > { %2100 = vmatpush3.msra.mxu0 %v1109_v48  ;;  %2156 = vmatpush3.msra.mxu1 %v1141_v49  ;;  %v1413_v49 = vld [vmem:[#allocation10 + $0xe8] sm:$0xff] }
  0xea   : > { %2101 = vmatprep.subr.mxu0 %v1124_v50  ;;  %2157 = vmatprep.subr.mxu1 %v1156_v51  ;;  %v1445_v50 = vld [vmem:[#allocation10 + $0x1e8] sm:$0xff] }
  0xeb   : > { %2102 = vmatpush3.msra.mxu0 %v1108_v52  ;;  %2158 = vmatpush3.msra.mxu1 %v1140_v53 }
  0xec   : > { %2103 = vmatprep.subr.mxu0 %v1123_v54  ;;  %2159 = vmatprep.subr.mxu1 %v1155_v55 }
  0xed   : > { %2104 = vmatpush3.msra.mxu0 %v1107_v56  ;;  %2160 = vmatpush3.msra.mxu1 %v1139_v57  ;;  %v1397_v57 = vld [vmem:[#allocation10 + $0x68] sm:$0xff] }
  0xee   : > { %2105 = vmatprep.subr.mxu0 %v1122_v58  ;;  %2161 = vmatprep.subr.mxu1 %v1154_v59  ;;  %v1429_v58 = vld [vmem:[#allocation10 + $0x168] sm:$0xff] }
  0xef   : > { %2106 = vmatpush3.msra.mxu0 %v1106_v60  ;;  %2162 = vmatpush3.msra.mxu1 %v1138_v61  ;;  %v1412_v60 = vld [vmem:[#allocation10 + $0xe0] sm:$0xff] }
  0xf0   : > { %2107 = vmatprep.subr.mxu0 %v1121_v62  ;;  %2163 = vmatprep.subr.mxu1 %v1153_v63  ;;  %v1444_v61 = vld [vmem:[#allocation10 + $0x1e0] sm:$0xff] }
  0xf1   : > { %2108 = vmatpush3.msra.mxu0 %v1105_v1  ;;  %2164 = vmatpush3.msra.mxu1 %v1137_v3  ;;  %v1396_v3 = vld [vmem:[#allocation10 + $0x60] sm:$0xff] }
  0xf2   : > { %2109 = vmatprep.subr.mxu0 %v1120_v4  ;;  %2165 = vmatprep.subr.mxu1 %v1152_v5  ;;  %v1428_v4 = vld [vmem:[#allocation10 + $0x160] sm:$0xff] }
  0xf3   : > { %2110 = vmatpush3.msra.mxu0 %v1104_v6  ;;  %2166 = vmatpush3.msra.mxu1 %v1136_v7  ;;  %v1411_v7 = vld [vmem:[#allocation10 + $0xd8] sm:$0xff] }
  0xf4   : > { %2111 = vmatprep.subr.mxu0 %v1119_v8  ;;  %2167 = vmatprep.subr.mxu1 %v1151_v9  ;;  %v1443_v8 = vld [vmem:[#allocation10 + $0x1d8] sm:$0xff] }
  0xf5   : > { %2112 = vmatpush3.msra.mxu0 %v1103_v10  ;;  %2168 = vmatpush3.msra.mxu1 %v1135_v12 }
  0xf6   : > { %2193 = vmatprep.subr.mxu0 %v1415_v13  ;;  %2249 = vmatprep.subr.mxu1 %v1447_v14 }
 0x157   : > { %v653_v25 = vpop.f32.mrf.mxu0  ;;  %v766_v26 = vpop.f32.mrf.mxu1 }
 0x158   : > { %v767_v27 = vadd.f32 %v766_v26, %v3009_v22  ;;  %v654_v20 = vadd.f32 %v653_v25, %v3012_v23  ;;  %v1442_v25 = vld [vmem:[#allocation10 + $0x1d0] sm:$0xff] }
 0x159   : > { %v655_v28 = vpop.f32.mrf.mxu0  ;;  %v768_v30 = vpop.f32.mrf.mxu1 }
 0x15a   : > { %v656_v31 = vadd.f32 %v655_v28, %v3015_v24  ;;  %v769_v29 = vadd.f32 %v768_v30, %v3018_v11  ;;  %v1041_v32 = vmax.f32 %v767_v27, 0.0  ;;  %v1039_v35 = vmax.f32 %v654_v20, 0.0  ;;  %v1394_v28 = vld [vmem:[#allocation10 + $0x50] sm:$0xff] }
 0x15b   : > { %v1426_v30 = vld [vmem:[#allocation10 + $0x150] sm:$0xff] }
 0x15c   : > { %v1040_v33 = vmax.f32 %v656_v31, 0.0  ;;  %v1042_v34 = vmax.f32 %v769_v29, 0.0 }
 0x15d   : > { %v659_v36 = vpop.f32.mrf.mxu0  ;;  %v772_v37 = vpop.f32.mrf.mxu1 }
 0x15e   : > { %v773_v40 = vadd.f32 %v772_v37, %v3009_v22  ;;  %1238 = vmatprep.mubr.f32.mxu0 %v1040_v33  ;;  %1343 = vmatprep.mubr.f32.mxu1 %v1042_v34  ;;  %v660_v43 = vadd.f32 %v659_v36, %v3012_v23  ;;  %v1441_v33 = vld [vmem:[#allocation10 + $0x1c8] sm:$0xff] }
 0x15f   : > { %v661_v44 = vpop.f32.mrf.mxu0  ;;  %v774_v45 = vpop.f32.mrf.mxu1  ;;  %1239 = vmatmul.mubr.f32.vlgmr.msra.gmra.mxu0 %v1039_v35  ;;  %1344 = vmatmul.mubr.f32.vlgmr.msra.gmra.mxu1 %v1041_v32  ;;  %v1409_v32 = vld [vmem:[#allocation10 + $0xc8] sm:$0xff] }
 0x160   : > { %v662_v47 = vadd.f32 %v661_v44, %v3015_v24  ;;  %v775_v48 = vadd.f32 %v774_v45, %v3018_v11  ;;  %2194 = vmatpush3.msra.mxu0 %v1399_v38  ;;  %2250 = vmatpush3.msra.mxu1 %v1431_v39  ;;  %v1049_v51 = vmax.f32 %v773_v40, 0.0  ;;  %v1047_v54 = vmax.f32 %v660_v43, 0.0  ;;  %v1393_v40 = vld [vmem:[#allocation10 + $0x48] sm:$0xff]  ;;  %v1408_v43 = vld [vmem:[#allocation10 + $0xc0] sm:$0xff] }
 0x161   : > { %2195 = vmatprep.subr.mxu0 %v1414_v41  ;;  %2251 = vmatprep.subr.mxu1 %v1446_v42  ;;  %v1425_v41 = vld [vmem:[#allocation10 + $0x148] sm:$0xff]  ;;  %v1440_v44 = vld [vmem:[#allocation10 + $0x1c0] sm:$0xff] }
 0x162   : > { %v1048_v52 = vmax.f32 %v662_v47, 0.0  ;;  %v1050_v53 = vmax.f32 %v775_v48, 0.0  ;;  %2196 = vmatpush3.msra.mxu0 %v1398_v46  ;;  %2252 = vmatpush3.msra.mxu1 %v1430_v0  ;;  %v1392_v47 = vld [vmem:[#allocation10 + $0x40] sm:$0xff] }
 0x163   : > { %v665_v55 = vpop.f32.mrf.mxu0  ;;  %v778_v56 = vpop.f32.mrf.mxu1  ;;  %2197 = vmatprep.subr.mxu0 %v1413_v49  ;;  %2253 = vmatprep.subr.mxu1 %v1445_v50  ;;  %v1424_v48 = vld [vmem:[#allocation10 + $0x140] sm:$0xff] }
 0x164   : > { %v779_v59 = vadd.f32 %v778_v56, %v3009_v22  ;;  %1243 = vmatprep.mubr.f32.mxu0 %v1048_v52  ;;  %1348 = vmatprep.mubr.f32.mxu1 %v1050_v53  ;;  %v666_v62 = vadd.f32 %v665_v55, %v3012_v23  ;;  %v1439_v52 = vld [vmem:[#allocation10 + $0x1b8] sm:$0xff] }
 0x165   : > { %v667_v63 = vpop.f32.mrf.mxu0  ;;  %v780_v1 = vpop.f32.mrf.mxu1  ;;  %1244 = vmatmul.mubr.f32.gmra.mxu0 %v1047_v54  ;;  %1349 = vmatmul.mubr.f32.gmra.mxu1 %v1049_v51  ;;  %v1407_v51 = vld [vmem:[#allocation10 + $0xb8] sm:$0xff] }
 0x166   : > { %v668_v5 = vadd.f32 %v667_v63, %v3015_v24  ;;  %v781_v6 = vadd.f32 %v780_v1, %v3018_v11  ;;  %2198 = vmatpush3.msra.mxu0 %v1397_v57  ;;  %2254 = vmatpush3.msra.mxu1 %v1429_v58  ;;  %v1057_v9 = vmax.f32 %v779_v59, 0.0  ;;  %v1055_v13 = vmax.f32 %v666_v62, 0.0  ;;  %v1391_v59 = vld [vmem:[#allocation10 + $0x38] sm:$0xff]  ;;  %v1406_v62 = vld [vmem:[#allocation10 + $0xb0] sm:$0xff] }
 0x167   : > { %2199 = vmatprep.subr.mxu0 %v1412_v60  ;;  %2255 = vmatprep.subr.mxu1 %v1444_v61  ;;  %v1423_v60 = vld [vmem:[#allocation10 + $0x138] sm:$0xff]  ;;  %v1438_v63 = vld [vmem:[#allocation10 + $0x1b0] sm:$0xff] }
 0x168   : > { %v1056_v10 = vmax.f32 %v668_v5, 0.0  ;;  %v1058_v12 = vmax.f32 %v781_v6, 0.0  ;;  %2200 = vmatpush3.msra.mxu0 %v1396_v3  ;;  %2256 = vmatpush3.msra.mxu1 %v1428_v4  ;;  %v1390_v5 = vld [vmem:[#allocation10 + $0x30] sm:$0xff] }
 0x169   : > { %v671_v14 = vpop.f32.mrf.mxu0  ;;  %v784_v15 = vpop.f32.mrf.mxu1  ;;  %2201 = vmatprep.subr.mxu0 %v1411_v7  ;;  %2257 = vmatprep.subr.mxu1 %v1443_v8  ;;  %v1422_v6 = vld [vmem:[#allocation10 + $0x130] sm:$0xff] }
 0x16a   : > { %v785_v21 = vadd.f32 %v784_v15, %v3009_v22  ;;  %1248 = vmatprep.mubr.f32.mxu0 %v1056_v10  ;;  %1353 = vmatprep.mubr.f32.mxu1 %v1058_v12  ;;  %v672_v26 = vadd.f32 %v671_v14, %v3012_v23  ;;  %v1437_v10 = vld [vmem:[#allocation10 + $0x1a8] sm:$0xff] }
 0x16b   : > { %v673_v27 = vpop.f32.mrf.mxu0  ;;  %v786_v20 = vpop.f32.mrf.mxu1  ;;  %1249 = vmatmul.mubr.f32.gmra.mxu0 %v1055_v13  ;;  %1354 = vmatmul.mubr.f32.gmra.mxu1 %v1057_v9  ;;  %v1405_v9 = vld [vmem:[#allocation10 + $0xa8] sm:$0xff] }
 0x16c   : > { %v674_v31 = vadd.f32 %v673_v27, %v3015_v24  ;;  %v787_v29 = vadd.f32 %v786_v20, %v3018_v11  ;;  %2202 = vmatpush3.msra.mxu0 %v1395_v17  ;;  %2258 = vmatpush3.msra.mxu1 %v1427_v18  ;;  %v1065_v34 = vmax.f32 %v785_v21, 0.0  ;;  %v1063_v37 = vmax.f32 %v672_v26, 0.0  ;;  %v1389_v21 = vld [vmem:[#allocation10 + $0x28] sm:$0xff]  ;;  %v1404_v26 = vld [vmem:[#allocation10 + $0xa0] sm:$0xff] }
 0x16d   : > { %2203 = vmatprep.subr.mxu0 %v1410_v2  ;;  %2259 = vmatprep.subr.mxu1 %v1442_v25  ;;  %v1421_v2 = vld [vmem:[#allocation10 + $0x128] sm:$0xff]  ;;  %v1436_v27 = vld [vmem:[#allocation10 + $0x1a0] sm:$0xff] }
 0x16e   : > { %v1064_v35 = vmax.f32 %v674_v31, 0.0  ;;  %v1066_v36 = vmax.f32 %v787_v29, 0.0  ;;  %2204 = vmatpush3.msra.mxu0 %v1394_v28  ;;  %2260 = vmatpush3.msra.mxu1 %v1426_v30  ;;  %v1388_v31 = vld [vmem:[#allocation10 + $0x20] sm:$0xff] }
 0x16f   : > { %v677_v38 = vpop.f32.mrf.mxu0  ;;  %v790_v39 = vpop.f32.mrf.mxu1  ;;  %2205 = vmatprep.subr.mxu0 %v1409_v32  ;;  %2261 = vmatprep.subr.mxu1 %v1441_v33  ;;  %v1420_v29 = vld [vmem:[#allocation10 + $0x120] sm:$0xff] }
 0x170   : > { %v791_v42 = vadd.f32 %v790_v39, %v3009_v22  ;;  %1253 = vmatprep.mubr.f32.mxu0 %v1064_v35  ;;  %1358 = vmatprep.mubr.f32.mxu1 %v1066_v36  ;;  %v678_v45 = vadd.f32 %v677_v38, %v3012_v23  ;;  %v1435_v35 = vld [vmem:[#allocation10 + $0x198] sm:$0xff]  ;;  %v573_v39 = vsub.s32 6, %v3000_v16 }
 0x171   : > { %v679_v46 = vpop.f32.mrf.mxu0  ;;  %v792_v0 = vpop.f32.mrf.mxu1  ;;  %1254 = vmatmul.mubr.f32.gmra.mxu0 %v1063_v37  ;;  %1359 = vmatmul.mubr.f32.gmra.mxu1 %v1065_v34  ;;  %v1403_v34 = vld [vmem:[#allocation10 + $0x98] sm:$0xff] }
 0x172   : > { %v680_v49 = vadd.f32 %v679_v46, %v3015_v24  ;;  %v793_v50 = vadd.f32 %v792_v0, %v3018_v11  ;;  %2206 = vmatpush3.msra.mxu0 %v1393_v40  ;;  %2262 = vmatpush3.msra.mxu1 %v1425_v41  ;;  %v1073_v53 = vmax.f32 %v791_v42, 0.0  ;;  %v1071_v56 = vmax.f32 %v678_v45, 0.0  ;;  %v1419_v45 = vld [vmem:[#allocation10 + $0x118] sm:$0xff] }
 0x173   : > { %2207 = vmatprep.subr.mxu0 %v1408_v43  ;;  %2263 = vmatprep.subr.mxu1 %v1440_v44  ;;  %v565_v43 = vsub.s32 4, %v3000_v16  ;;  %v1387_v44 = vld [vmem:[#allocation10 + $0x18] sm:$0xff]  ;;  %v569_v0 = vsub.s32 5, %v3000_v16 }
 0x174   : > { %v1072_v54 = vmax.f32 %v680_v49, 0.0  ;;  %v1074_v55 = vmax.f32 %v793_v50, 0.0  ;;  %2208 = vmatpush3.msra.mxu0 %v1392_v47  ;;  %2264 = vmatpush3.msra.mxu1 %v1424_v48  ;;  %v577_v47 = vsub.s32 7, %v3000_v16  ;;  %v1402_v48 = vld [vmem:[#allocation10 + $0x90] sm:$0xff]  ;;  %v1401_v16 = vld [vmem:[#allocation10 + $0x88] sm:$0xff] }
 0x175   : > { %v683_v57 = vpop.f32.mrf.mxu0  ;;  %v796_v58 = vpop.f32.mrf.mxu1  ;;  %2209 = vmatprep.subr.mxu0 %v1407_v51  ;;  %2265 = vmatprep.subr.mxu1 %v1439_v52  ;;  %v1434_v49 = vld [vmem:[#allocation10 + $0x190] sm:$0xff] }
 0x176   : > { %v797_v61 = vadd.f32 %v796_v58, %v3009_v22  ;;  %1258 = vmatprep.mubr.f32.mxu0 %v1072_v54  ;;  %1363 = vmatprep.mubr.f32.mxu1 %v1074_v55  ;;  %v684_v1 = vadd.f32 %v683_v57, %v3012_v23  ;;  %v1418_v54 = vld [vmem:[#allocation10 + $0x110] sm:$0xff]  ;;  %v1433_v57 = vld [vmem:[#allocation10 + $0x188] sm:$0xff] }
 0x177   : > { %v685_v3 = vpop.f32.mrf.mxu0  ;;  %v798_v4 = vpop.f32.mrf.mxu1  ;;  %1259 = vmatmul.mubr.f32.gmra.mxu0 %v1071_v56  ;;  %1364 = vmatmul.mubr.f32.gmra.mxu1 %v1073_v53  ;;  %v1386_v53 = vld [vmem:[#allocation10 + $0x10] sm:$0xff]  ;;  %v3057_v56 = vrot.slane %v3004_v19, %v573_v39 }
 0x178   : > { %v686_v7 = vadd.f32 %v685_v3, %v3015_v24  ;;  %v799_v8 = vadd.f32 %v798_v4, %v3018_v11  ;;  %2210 = vmatpush3.msra.mxu0 %v1391_v59  ;;  %2266 = vmatpush3.msra.mxu1 %v1423_v60  ;;  %v1081_v12 = vmax.f32 %v797_v61, 0.0  ;;  %v1079_v15 = vmax.f32 %v684_v1, 0.0  ;;  %v1385_v1 = vld [vmem:[#allocation10 + $0x8] sm:$0xff] }
 0x179   : > { %2211 = vmatprep.subr.mxu0 %v1406_v62  ;;  %2267 = vmatprep.subr.mxu1 %v1438_v63  ;;  %v3063_v61 = vrot.slane %v3004_v19, %v569_v0  ;;  %v1417_v3 = vld [vmem:[#allocation10 + $0x108] sm:$0xff] }
 0x17a   : > { %v1080_v13 = vmax.f32 %v686_v7, 0.0  ;;  %v1082_v14 = vmax.f32 %v799_v8, 0.0  ;;  %2212 = vmatpush3.msra.mxu0 %v1390_v5  ;;  %2268 = vmatpush3.msra.mxu1 %v1422_v6  ;;  %v1400_v5 = vld [vmem:[#allocation10 + $0x80] sm:$0xff] }
 0x17b   : > { %v689_v17 = vpop.f32.mrf.mxu0  ;;  %v802_v18 = vpop.f32.mrf.mxu1  ;;  %2213 = vmatprep.subr.mxu0 %v1405_v9  ;;  %2269 = vmatprep.subr.mxu1 %v1437_v10  ;;  %v1432_v6 = vld [vmem:[#allocation10 + $0x180] sm:$0xff] }
 0x17c   : > { %v803_v25 = vadd.f32 %v802_v18, %v3009_v22  ;;  %1263 = vmatprep.mubr.f32.mxu0 %v1080_v13  ;;  %1368 = vmatprep.mubr.f32.mxu1 %v1082_v14  ;;  %v690_v20 = vadd.f32 %v689_v17, %v3012_v23  ;;  %v1384_v9 = vld [vmem:[#allocation10] sm:$0xff] }
 0x17d   : > { %v691_v28 = vpop.f32.mrf.mxu0  ;;  %v804_v30 = vpop.f32.mrf.mxu1  ;;  %1264 = vmatmul.mubr.f32.gmra.mxu0 %v1079_v15  ;;  %1369 = vmatmul.mubr.f32.gmra.mxu1 %v1081_v12  ;;  %v1416_v10 = vld [vmem:[#allocation10 + $0x100] sm:$0xff] }
 0x17e   : > { %v692_v32 = vadd.f32 %v691_v28, %v3015_v24  ;;  %v805_v33 = vadd.f32 %v804_v30, %v3018_v11  ;;  %2214 = vmatpush3.msra.mxu0 %v1389_v21  ;;  %2270 = vmatpush3.msra.mxu1 %v1421_v2  ;;  %v1089_v36 = vmax.f32 %v803_v25, 0.0  ;;  %v1087_v40 = vmax.f32 %v690_v20, 0.0 }
 0x17f   : > { %2215 = vmatprep.subr.mxu0 %v1404_v26  ;;  %2271 = vmatprep.subr.mxu1 %v1436_v27 }
 0x180   : > { %v1088_v37 = vmax.f32 %v692_v32, 0.0  ;;  %v1090_v38 = vmax.f32 %v805_v33, 0.0  ;;  %2216 = vmatpush3.msra.mxu0 %v1388_v31  ;;  %2272 = vmatpush3.msra.mxu1 %v1420_v29 }
 0x181   : > { %v695_v41 = vpop.f32.mrf.mxu0  ;;  %v808_v42 = vpop.f32.mrf.mxu1  ;;  %2217 = vmatprep.subr.mxu0 %v1403_v34  ;;  %2273 = vmatprep.subr.mxu1 %v1435_v35 }
 0x182   : > { %v809_v46 = vadd.f32 %v808_v42, %v3009_v22  ;;  %1268 = vmatprep.mubr.f32.mxu0 %v1088_v37  ;;  %1373 = vmatprep.mubr.f32.mxu1 %v1090_v38  ;;  %v696_v50 = vadd.f32 %v695_v41, %v3012_v23  ;;  %v3060_v23 = vrot.slane %v3004_v19, %v565_v43 }
 0x183   : > { %v697_v51 = vpop.f32.mrf.mxu0  ;;  %v810_v52 = vpop.f32.mrf.mxu1  ;;  %1269 = vmatmul.mubr.f32.gmra.mxu0 %v1087_v40  ;;  %1374 = vmatmul.mubr.f32.gmra.mxu1 %v1089_v36 }
 0x184   : > { %v698_v55 = vadd.f32 %v697_v51, %v3015_v24  ;;  %v811_v22 = vadd.f32 %v810_v52, %v3018_v11  ;;  %2218 = vmatpush3.msra.mxu0 %v1387_v44  ;;  %2274 = vmatpush3.msra.mxu1 %v1419_v45  ;;  %v1097_v58 = vmax.f32 %v809_v46, 0.0  ;;  %v3066_v24 = vrot.slane %v3004_v19, %v577_v47 }
 0x185   : > { %2219 = vmatprep.subr.mxu0 %v1402_v48  ;;  %2275 = vmatprep.subr.mxu1 %v1434_v49  ;;  %v1095_v11 = vmax.f32 %v696_v50, 0.0 }
 0x186   : > { %v1096_v59 = vmax.f32 %v698_v55, 0.0  ;;  %v1098_v60 = vmax.f32 %v811_v22, 0.0  ;;  %2220 = vmatpush3.msra.mxu0 %v1386_v53  ;;  %2276 = vmatpush3.msra.mxu1 %v1418_v54 }
 0x187   : > { %v879_v62 = vpop.f32.mrf.mxu0  ;;  %v992_v63 = vpop.f32.mrf.mxu1  ;;  %2221 = vmatprep.subr.mxu0 %v1401_v16  ;;  %2277 = vmatprep.subr.mxu1 %v1433_v57 }
 0x188   : > { %v993_v4 = vadd.f32 %v992_v63, %v3057_v56  ;;  %1273 = vmatprep.mubr.f32.mxu0 %v1096_v59  ;;  %1378 = vmatprep.mubr.f32.mxu1 %v1098_v60  ;;  %v880_v7 = vadd.f32 %v879_v62, %v3060_v23 }
 0x189   : > { %v881_v8 = vpop.f32.mrf.mxu0  ;;  %v994_v19 = vpop.f32.mrf.mxu1  ;;  %1274 = vmatmul.mubr.f32.gmra.mxu0 %v1095_v11  ;;  %1379 = vmatmul.mubr.f32.gmra.mxu1 %v1097_v58 }
 0x18a   : > { %v882_v12 = vadd.f32 %v881_v8, %v3063_v61  ;;  %v995_v13 = vadd.f32 %v994_v19, %v3066_v24  ;;  %2222 = vmatpush3.msra.mxu0 %v1385_v1  ;;  %2278 = vmatpush3.msra.mxu1 %v1417_v3  ;;  %v1045_v14 = vmax.f32 %v993_v4, 0.0  ;;  %v1043_v25 = vmax.f32 %v880_v7, 0.0 }
 0x18b   : > { %v885_v15 = vpop.f32.mrf.mxu0  ;;  %v998_v17 = vpop.f32.mrf.mxu1  ;;  %2223 = vmatprep.subr.mxu0 %v1400_v5  ;;  %2279 = vmatprep.subr.mxu1 %v1432_v6 }
 0x18c   : > { %v1044_v18 = vmax.f32 %v882_v12, 0.0  ;;  %v1046_v21 = vmax.f32 %v995_v13, 0.0  ;;  %v999_v2 = vadd.f32 %v998_v17, %v3057_v56  ;;  %2224 = vmatpush3.msra.mxu0 %v1384_v9  ;;  %2280 = vmatpush3.msra.mxu1 %v1416_v10  ;;  %v886_v26 = vadd.f32 %v885_v15, %v3060_v23 }
 0x18d   : > { %v887_v27 = vpop.f32.mrf.mxu0  ;;  %v1000_v20 = vpop.f32.mrf.mxu1 }
 0x18e   : > { %v888_v28 = vadd.f32 %v887_v27, %v3063_v61  ;;  %v1001_v30 = vadd.f32 %v1000_v20, %v3066_v24  ;;  %1519 = vmatprep.mubr.f32.mxu0 %v1044_v18  ;;  %1624 = vmatprep.mubr.f32.mxu1 %v1046_v21  ;;  %v1053_v31 = vmax.f32 %v999_v2, 0.0  ;;  %v1051_v36 = vmax.f32 %v886_v26, 0.0 }
 0x18f   : > { %v891_v29 = vpop.f32.mrf.mxu0  ;;  %v1004_v32 = vpop.f32.mrf.mxu1  ;;  %1520 = vmatmul.mubr.f32.vlgmr.msra.gmra.mxu0 %v1043_v25  ;;  %1625 = vmatmul.mubr.f32.vlgmr.msra.gmra.mxu1 %v1045_v14 }
 0x190   : > { %v1052_v33 = vmax.f32 %v888_v28, 0.0  ;;  %v1054_v34 = vmax.f32 %v1001_v30, 0.0  ;;  %v1005_v35 = vadd.f32 %v1004_v32, %v3057_v56  ;;  %v892_v37 = vadd.f32 %v891_v29, %v3060_v23 }
 0x191   : > { %v893_v38 = vpop.f32.mrf.mxu0  ;;  %v1006_v39 = vpop.f32.mrf.mxu1 }
 0x192   : > { %v894_v40 = vadd.f32 %v893_v38, %v3063_v61  ;;  %v1007_v41 = vadd.f32 %v1006_v39, %v3066_v24  ;;  %1524 = vmatprep.mubr.f32.mxu0 %v1052_v33  ;;  %1629 = vmatprep.mubr.f32.mxu1 %v1054_v34  ;;  %v1061_v42 = vmax.f32 %v1005_v35, 0.0  ;;  %v1059_v47 = vmax.f32 %v892_v37, 0.0 }
 0x193   : > { %v897_v43 = vpop.f32.mrf.mxu0  ;;  %v1010_v44 = vpop.f32.mrf.mxu1  ;;  %1525 = vmatmul.mubr.f32.gmra.mxu0 %v1051_v36  ;;  %1630 = vmatmul.mubr.f32.gmra.mxu1 %v1053_v31 }
 0x194   : > { %v1060_v45 = vmax.f32 %v894_v40, 0.0  ;;  %v1062_v46 = vmax.f32 %v1007_v41, 0.0  ;;  %v1011_v0 = vadd.f32 %v1010_v44, %v3057_v56  ;;  %v898_v48 = vadd.f32 %v897_v43, %v3060_v23 }
 0x195   : > { %v899_v49 = vpop.f32.mrf.mxu0  ;;  %v1012_v50 = vpop.f32.mrf.mxu1 }
 0x196   : > { %v900_v51 = vadd.f32 %v899_v49, %v3063_v61  ;;  %v1013_v52 = vadd.f32 %v1012_v50, %v3066_v24  ;;  %1529 = vmatprep.mubr.f32.mxu0 %v1060_v45  ;;  %1634 = vmatprep.mubr.f32.mxu1 %v1062_v46  ;;  %v1069_v53 = vmax.f32 %v1011_v0, 0.0  ;;  %v1067_v58 = vmax.f32 %v898_v48, 0.0 }
 0x197   : > { %v903_v54 = vpop.f32.mrf.mxu0  ;;  %v1016_v55 = vpop.f32.mrf.mxu1  ;;  %1530 = vmatmul.mubr.f32.gmra.mxu0 %v1059_v47  ;;  %1635 = vmatmul.mubr.f32.gmra.mxu1 %v1061_v42 }
 0x198   : > { %v1068_v22 = vmax.f32 %v900_v51, 0.0  ;;  %v1070_v16 = vmax.f32 %v1013_v52, 0.0  ;;  %v1017_v57 = vadd.f32 %v1016_v55, %v3057_v56  ;;  %v904_v59 = vadd.f32 %v903_v54, %v3060_v23 }
 0x199   : > { %v905_v60 = vpop.f32.mrf.mxu0  ;;  %v1018_v11 = vpop.f32.mrf.mxu1 }
 0x19a   : > { %v906_v62 = vadd.f32 %v905_v60, %v3063_v61  ;;  %v1019_v63 = vadd.f32 %v1018_v11, %v3066_v24  ;;  %1534 = vmatprep.mubr.f32.mxu0 %v1068_v22  ;;  %1639 = vmatprep.mubr.f32.mxu1 %v1070_v16  ;;  %v1077_v1 = vmax.f32 %v1017_v57, 0.0  ;;  %v1075_v8 = vmax.f32 %v904_v59, 0.0 }
 0x19b   : > { %v909_v3 = vpop.f32.mrf.mxu0  ;;  %v1022_v4 = vpop.f32.mrf.mxu1  ;;  %1535 = vmatmul.mubr.f32.gmra.mxu0 %v1067_v58  ;;  %1640 = vmatmul.mubr.f32.gmra.mxu1 %v1069_v53 }
 0x19c   : > { %v1076_v5 = vmax.f32 %v906_v62, 0.0  ;;  %v1078_v6 = vmax.f32 %v1019_v63, 0.0  ;;  %v1023_v7 = vadd.f32 %v1022_v4, %v3057_v56  ;;  %v910_v19 = vadd.f32 %v909_v3, %v3060_v23 }
 0x19d   : > { %v911_v9 = vpop.f32.mrf.mxu0  ;;  %v1024_v10 = vpop.f32.mrf.mxu1 }
 0x19e   : > { %v912_v12 = vadd.f32 %v911_v9, %v3063_v61  ;;  %v1025_v13 = vadd.f32 %v1024_v10, %v3066_v24  ;;  %1539 = vmatprep.mubr.f32.mxu0 %v1076_v5  ;;  %1644 = vmatprep.mubr.f32.mxu1 %v1078_v6  ;;  %v1085_v14 = vmax.f32 %v1023_v7, 0.0  ;;  %v1083_v25 = vmax.f32 %v910_v19, 0.0 }
 0x19f   : > { %v915_v15 = vpop.f32.mrf.mxu0  ;;  %v1028_v17 = vpop.f32.mrf.mxu1  ;;  %1540 = vmatmul.mubr.f32.gmra.mxu0 %v1075_v8  ;;  %1645 = vmatmul.mubr.f32.gmra.mxu1 %v1077_v1 }
 0x1a0   : > { %v1084_v18 = vmax.f32 %v912_v12, 0.0  ;;  %v1086_v21 = vmax.f32 %v1025_v13, 0.0  ;;  %v1029_v2 = vadd.f32 %v1028_v17, %v3057_v56  ;;  %v916_v26 = vadd.f32 %v915_v15, %v3060_v23 }
 0x1a1   : > { %v917_v27 = vpop.f32.mrf.mxu0  ;;  %v1030_v20 = vpop.f32.mrf.mxu1 }
 0x1a2   : > { %v918_v28 = vadd.f32 %v917_v27, %v3063_v61  ;;  %v1031_v30 = vadd.f32 %v1030_v20, %v3066_v24  ;;  %1544 = vmatprep.mubr.f32.mxu0 %v1084_v18  ;;  %1649 = vmatprep.mubr.f32.mxu1 %v1086_v21  ;;  %v1093_v31 = vmax.f32 %v1029_v2, 0.0  ;;  %v1091_v36 = vmax.f32 %v916_v26, 0.0 }
 0x1a3   : > { %v921_v29 = vpop.f32.mrf.mxu0  ;;  %v1034_v32 = vpop.f32.mrf.mxu1  ;;  %1545 = vmatmul.mubr.f32.gmra.mxu0 %v1083_v25  ;;  %1650 = vmatmul.mubr.f32.gmra.mxu1 %v1085_v14 }
 0x1a4   : > { %v1092_v33 = vmax.f32 %v918_v28, 0.0  ;;  %v1094_v34 = vmax.f32 %v1031_v30, 0.0  ;;  %v1035_v35 = vadd.f32 %v1034_v32, %v3057_v56  ;;  %v922_v37 = vadd.f32 %v921_v29, %v3060_v23 }
 0x1a5   : > { %v923_v38 = vpop.f32.mrf.mxu0  ;;  %v1036_v39 = vpop.f32.mrf.mxu1 }
 0x1a6   : > { %v924_v40 = vadd.f32 %v923_v38, %v3063_v61  ;;  %v1037_v41 = vadd.f32 %v1036_v39, %v3066_v24  ;;  %1549 = vmatprep.mubr.f32.mxu0 %v1092_v33  ;;  %1654 = vmatprep.mubr.f32.mxu1 %v1094_v34  ;;  %v1101_v42 = vmax.f32 %v1035_v35, 0.0  ;;  %v1099_v45 = vmax.f32 %v922_v37, 0.0  ;;  %v2070_v61 = vld [vmem:[%s3280_s4] ss:$0 sm:$0xff] }
 0x1a7   : > { %1550 = vmatmul.mubr.f32.gmra.mxu0 %v1091_v36  ;;  %1655 = vmatmul.mubr.f32.gmra.mxu1 %v1093_v31 }
 0x1a8   : > { %v1100_v43 = vmax.f32 %v924_v40, 0.0  ;;  %v1102_v44 = vmax.f32 %v1037_v41, 0.0 }
 0x1aa   : > { %1554 = vmatprep.mubr.f32.mxu0 %v1100_v43  ;;  %1659 = vmatprep.mubr.f32.mxu1 %v1102_v44 }
 0x1ab   : > { %1555 = vmatmul.mubr.f32.gmra.mxu0 %v1099_v45  ;;  %1660 = vmatmul.mubr.f32.gmra.mxu1 %v1101_v42 }
 0x21f   : > { %v2113_v56 = vpop.f32.mrf.mxu0  ;;  %v2169_v23 = vpop.f32.mrf.mxu1 }
 0x221   : > { %v2114_v46 = vpop.f32.mrf.mxu0  ;;  %v2170_v24 = vpop.f32.mrf.mxu1 }
 0x222   : > { %v2115_v0 = vadd.f32 %v2114_v46, %v2113_v56  ;;  %v2171_v47 = vadd.f32 %v2170_v24, %v2169_v23  ;;  %v3122_v24 = vld [vmem:[%s3282_s6] ss:$0 sm:$0xff] }
 0x224   : > { %v1241_v48 = vadd.f32 %v2115_v0, %v2070_v61 }
 0x225   : > { %v2116_v49 = vpop.f32.mrf.mxu0  ;;  %v2172_v50 = vpop.f32.mrf.mxu1 }
 0x226   : > { %v3103_v51 = vadd.f32 %v2171_v47, %v1241_v48 }
 0x227   : > { %v2117_v52 = vpop.f32.mrf.mxu0  ;;  %v2173_v53 = vpop.f32.mrf.mxu1 }
 0x228   : > { %v2118_v54 = vadd.f32 %v2117_v52, %v2116_v49  ;;  %v2174_v55 = vadd.f32 %v2173_v53, %v2172_v50 }
 0x22a   : > { %v1246_v22 = vadd.f32 %v2118_v54, %v2070_v61 }
 0x22b   : > { %v2119_v16 = vpop.f32.mrf.mxu0  ;;  %v2175_v57 = vpop.f32.mrf.mxu1 }
 0x22c   : > { %v3105_v58 = vadd.f32 %v2174_v55, %v1246_v22 }
 0x22d   : > { %v2120_v59 = vpop.f32.mrf.mxu0  ;;  %v2176_v60 = vpop.f32.mrf.mxu1 }
 0x22e   : > { %v2121_v11 = vadd.f32 %v2120_v59, %v2119_v16  ;;  %v2177_v62 = vadd.f32 %v2176_v60, %v2175_v57 }
 0x230   : > { %v1251_v63 = vadd.f32 %v2121_v11, %v2070_v61 }
 0x231   : > { %v2122_v1 = vpop.f32.mrf.mxu0  ;;  %v2178_v3 = vpop.f32.mrf.mxu1 }
 0x232   : > { %v3107_v4 = vadd.f32 %v2177_v62, %v1251_v63 }
 0x233   : > { %v2123_v5 = vpop.f32.mrf.mxu0  ;;  %v2179_v6 = vpop.f32.mrf.mxu1 }
 0x234   : > { %v2124_v7 = vadd.f32 %v2123_v5, %v2122_v1  ;;  %v2180_v8 = vadd.f32 %v2179_v6, %v2178_v3 }
 0x236   : > { %v1256_v19 = vadd.f32 %v2124_v7, %v2070_v61 }
 0x237   : > { %v2125_v9 = vpop.f32.mrf.mxu0  ;;  %v2181_v10 = vpop.f32.mrf.mxu1 }
 0x238   : > { %v3109_v12 = vadd.f32 %v2180_v8, %v1256_v19 }
 0x239   : > { %v2126_v13 = vpop.f32.mrf.mxu0  ;;  %v2182_v14 = vpop.f32.mrf.mxu1 }
 0x23a   : > { %v2127_v15 = vadd.f32 %v2126_v13, %v2125_v9  ;;  %v2183_v17 = vadd.f32 %v2182_v14, %v2181_v10 }
 0x23c   : > { %v1261_v18 = vadd.f32 %v2127_v15, %v2070_v61 }
 0x23d   : > { %v2128_v21 = vpop.f32.mrf.mxu0  ;;  %v2184_v2 = vpop.f32.mrf.mxu1 }
 0x23e   : > { %v3111_v25 = vadd.f32 %v2183_v17, %v1261_v18 }
 0x23f   : > { %v2129_v26 = vpop.f32.mrf.mxu0  ;;  %v2185_v27 = vpop.f32.mrf.mxu1 }
 0x240   : > { %v2130_v20 = vadd.f32 %v2129_v26, %v2128_v21  ;;  %v2186_v28 = vadd.f32 %v2185_v27, %v2184_v2 }
 0x242   : > { %v1266_v30 = vadd.f32 %v2130_v20, %v2070_v61 }
 0x243   : > { %v2131_v31 = vpop.f32.mrf.mxu0  ;;  %v2187_v29 = vpop.f32.mrf.mxu1 }
 0x244   : > { %v3113_v32 = vadd.f32 %v2186_v28, %v1266_v30 }
 0x245   : > { %v2132_v33 = vpop.f32.mrf.mxu0  ;;  %v2188_v34 = vpop.f32.mrf.mxu1 }
 0x246   : > { %v2133_v35 = vadd.f32 %v2132_v33, %v2131_v31  ;;  %v2189_v36 = vadd.f32 %v2188_v34, %v2187_v29 }
 0x248   : > { %v1271_v37 = vadd.f32 %v2133_v35, %v2070_v61 }
 0x249   : > { %v2134_v38 = vpop.f32.mrf.mxu0  ;;  %v2190_v39 = vpop.f32.mrf.mxu1 }
 0x24a   : > { %v3115_v40 = vadd.f32 %v2189_v36, %v1271_v37 }
 0x24b   : > { %v2135_v41 = vpop.f32.mrf.mxu0  ;;  %v2191_v42 = vpop.f32.mrf.mxu1 }
 0x24c   : > { %v2136_v43 = vadd.f32 %v2135_v41, %v2134_v38  ;;  %v2192_v44 = vadd.f32 %v2191_v42, %v2190_v39 }
 0x24e   : > { %v1276_v45 = vadd.f32 %v2136_v43, %v2070_v61 }
 0x24f   : > { %v2225_v56 = vpop.f32.mrf.mxu0  ;;  %v2281_v23 = vpop.f32.mrf.mxu1 }
 0x250   : > { %v3117_v46 = vadd.f32 %v2192_v44, %v1276_v45 }
 0x251   : > { %v2226_v0 = vpop.f32.mrf.mxu0  ;;  %v2282_v47 = vpop.f32.mrf.mxu1 }
 0x252   : > { %v2227_v48 = vadd.f32 %v2226_v0, %v2225_v56  ;;  %v2283_v53 = vadd.f32 %v2282_v47, %v2281_v23 }
 0x253   : > { %v2228_v49 = vpop.f32.mrf.mxu0  ;;  %v2284_v50 = vpop.f32.mrf.mxu1 }
 0x254   : > { %v1522_v52 = vadd.f32 %v2227_v48, %v3122_v24 }
 0x255   : > { %v2229_v54 = vpop.f32.mrf.mxu0  ;;  %v2285_v55 = vpop.f32.mrf.mxu1 }
 0x256   : > { %v1627_v61 = vadd.f32 %v2283_v53, %v1522_v52  ;;  %v2230_v22 = vadd.f32 %v2229_v54, %v2228_v49  ;;  %v2286_v11 = vadd.f32 %v2285_v55, %v2284_v50 }
 0x257   : > { %v2231_v16 = vpop.f32.mrf.mxu0  ;;  %v2287_v57 = vpop.f32.mrf.mxu1 }
 0x258   : > { %v1667_v59 = vsub.f32 0.0, %v1627_v61  ;;  %v1527_v60 = vadd.f32 %v2230_v22, %v3122_v24 }
 0x259   : > { %v2232_v62 = vpop.f32.mrf.mxu0  ;;  %v2288_v63 = vpop.f32.mrf.mxu1 }
 0x25a   : > { %v1675_v1 = vmul.f32 1.442695, %v1667_v59  ;;  %v1632_v3 = vadd.f32 %v2286_v11, %v1527_v60  ;;  %v2233_v5 = vadd.f32 %v2232_v62, %v2231_v16  ;;  %v2289_v9 = vadd.f32 %v2288_v63, %v2287_v57 }
 0x25b   : > { %v2234_v6 = vpop.f32.mrf.mxu0  ;;  %v2290_v7 = vpop.f32.mrf.mxu1 }
 0x25c   : > { %2399 = vpow2.f32 %v1675_v1  ;;  %v1668_v8 = vsub.f32 0.0, %v1632_v3  ;;  %v1532_v19 = vadd.f32 %v2233_v5, %v3122_v24 }
 0x25d   : > { %v2235_v10 = vpop.f32.mrf.mxu0  ;;  %v2291_v13 = vpop.f32.mrf.mxu1 }
 0x25e   : > { %v1677_v14 = vmul.f32 1.442695, %v1668_v8  ;;  %v1637_v15 = vadd.f32 %v2289_v9, %v1532_v19  ;;  %v2236_v17 = vadd.f32 %v2235_v10, %v2234_v6  ;;  %v2292_v27 = vadd.f32 %v2291_v13, %v2290_v7 }
 0x25f   : > { %v2237_v18 = vpop.f32.mrf.mxu0  ;;  %v2293_v21 = vpop.f32.mrf.mxu1 }
 0x260   : > { %2401 = vpow2.f32 %v1677_v14  ;;  %v1669_v2 = vsub.f32 0.0, %v1637_v15  ;;  %v1537_v26 = vadd.f32 %v2236_v17, %v3122_v24 }
 0x261   : > { %v2238_v20 = vpop.f32.mrf.mxu0  ;;  %v2294_v28 = vpop.f32.mrf.mxu1 }
 0x262   : > { %v1679_v30 = vmul.f32 1.442695, %v1669_v2  ;;  %v1642_v31 = vadd.f32 %v2292_v27, %v1537_v26  ;;  %v2239_v29 = vadd.f32 %v2238_v20, %v2237_v18  ;;  %v2295_v37 = vadd.f32 %v2294_v28, %v2293_v21  ;;  %v2463_v26 = vld [vmem:[%s2898_s29] sm:$0xff] }
 0x263   : > { %v2240_v33 = vpop.f32.mrf.mxu0  ;;  %v2296_v34 = vpop.f32.mrf.mxu1 }
 0x264   : > { %2403 = vpow2.f32 %v1679_v30  ;;  %v1670_v35 = vsub.f32 0.0, %v1642_v31  ;;  %v1542_v36 = vadd.f32 %v2239_v29, %v3122_v24 }
 0x265   : > { %v2241_v38 = vpop.f32.mrf.mxu0  ;;  %v2297_v39 = vpop.f32.mrf.mxu1 }
 0x266   : > { %v1681_v41 = vmul.f32 1.442695, %v1670_v35  ;;  %v1647_v42 = vadd.f32 %v2295_v37, %v1542_v36  ;;  %v2242_v43 = vadd.f32 %v2241_v38, %v2240_v33  ;;  %v2298_v0 = vadd.f32 %v2297_v39, %v2296_v34  ;;  %v2464_v34 = vld [vmem:[%s2898_s29 + $0x8] sm:$0xff] }
 0x267   : > { %v2243_v44 = vpop.f32.mrf.mxu0  ;;  %v2299_v45 = vpop.f32.mrf.mxu1 }
 0x268   : > { %2405 = vpow2.f32 %v1681_v41  ;;  %v1671_v56 = vsub.f32 0.0, %v1647_v42  ;;  %v1547_v23 = vadd.f32 %v2242_v43, %v3122_v24 }
 0x269   : > { %v2400_v47 = vpop.eup %2399  ;;  %v2244_v48 = vpop.f32.mrf.mxu0 }
 0x26a   : > { %v2300_v49 = vpop.f32.mrf.mxu1  ;;  %v1691_v50 = vadd.f32 1.0, %v2400_v47  ;;  %v1683_v52 = vmul.f32 1.442695, %v1671_v56  ;;  %v1652_v53 = vadd.f32 %v2298_v0, %v1547_v23  ;;  %v2245_v54 = vadd.f32 %v2244_v48, %v2243_v44 }
 0x26b   : > { %v2246_v55 = vpop.f32.mrf.mxu0  ;;  %v2301_v57 = vadd.f32 %v2300_v49, %v2299_v45 }
 0x26c   : > { %v2302_v61 = vpop.f32.mrf.mxu1  ;;  %2407 = vrcp.f32 %v1691_v50  ;;  %v1672_v22 = vsub.f32 0.0, %v1652_v53  ;;  %v1552_v16 = vadd.f32 %v2245_v54, %v3122_v24 }
 0x26d   : > { %v2402_v59 = vpop.eup %2401  ;;  %2409 = vpow2.f32 %v1683_v52  ;;  %v2247_v60 = vpop.f32.mrf.mxu0 }
 0x26e   : > { %v2303_v11 = vpop.f32.mrf.mxu1  ;;  %v1692_v62 = vadd.f32 1.0, %v2402_v59  ;;  %v1685_v63 = vmul.f32 1.442695, %v1672_v22  ;;  %v1657_v1 = vadd.f32 %v2301_v57, %v1552_v16  ;;  %v2248_v3 = vadd.f32 %v2247_v60, %v2246_v55  ;;  %v2468_v57 = vld [vmem:[%s2898_s29 + $0x28] sm:$0xff] }
 0x26f   : > { %v2304_v7 = vadd.f32 %v2303_v11, %v2302_v61 }
 0x270   : > { %2411 = vrcp.f32 %v1692_v62  ;;  %v1673_v5 = vsub.f32 0.0, %v1657_v1  ;;  %v1557_v6 = vadd.f32 %v2248_v3, %v3122_v24 }
 0x271   : > { %v2404_v8 = vpop.eup %2403  ;;  %2413 = vpow2.f32 %v1685_v63  ;;  %v2469_v63 = vld [vmem:[%s2898_s29 + $0x30] sm:$0xff] }
 0x272   : > { %v1693_v19 = vadd.f32 1.0, %v2404_v8  ;;  %v1687_v9 = vmul.f32 1.442695, %v1673_v5  ;;  %v1662_v10 = vadd.f32 %v2304_v7, %v1557_v6  ;;  %v2470_v7 = vld [vmem:[%s2898_s29 + $0x38] sm:$0xff] }
 0x274   : > { %2415 = vrcp.f32 %v1693_v19  ;;  %v1674_v13 = vsub.f32 0.0, %v1662_v10 }
 0x275   : > { %v2406_v14 = vpop.eup %2405  ;;  %2417 = vpow2.f32 %v1687_v9 }
 0x276   : > { %v1694_v15 = vadd.f32 1.0, %v2406_v14  ;;  %v1689_v17 = vmul.f32 1.442695, %v1674_v13 }
 0x278   : > { %2419 = vrcp.f32 %v1694_v15 }
 0x279   : > { %v2408_v18 = vpop.eup %2407  ;;  %2421 = vpow2.f32 %v1689_v17 }
 0x27a   : > { %v2410_v21 = vpop.eup %2409  ;;  %v1715_v2 = vsub.f32 1.0, %v2408_v18  ;;  %v1707_v27 = vmul.f32 %v2463_v26, %v2408_v18 }
 0x27b   : > { %v1695_v24 = vadd.f32 1.0, %v2410_v21 }
 0x27c   : > { %v1723_v20 = vmul.f32 %v1715_v2, %v3103_v51  ;;  %v2465_v51 = vld [vmem:[%s2898_s29 + $0x10] sm:$0xff] }
 0x27d   : > { %v2412_v28 = vpop.eup %2411  ;;  %2423 = vrcp.f32 %v1695_v24 }
 0x27e   : > { %v2414_v30 = vpop.eup %2413  ;;  %v1731_v31 = vadd.f32 %v1723_v20, %v1707_v27  ;;  %v1716_v29 = vsub.f32 1.0, %v2412_v28  ;;  %v1708_v35 = vmul.f32 %v2464_v34, %v2412_v28 }
 0x27f   : > { %v1696_v33 = vadd.f32 1.0, %v2414_v30 }
 0x280   : > { %1739 = vadd.xlane.f32.xlu0 %v1731_v31  ;;  %v1724_v36 = vmul.f32 %v1716_v29, %v3105_v58  ;;  %v2466_v58 = vld [vmem:[%s2898_s29 + $0x18] sm:$0xff] }
 0x281   : > { %v2416_v37 = vpop.eup %2415  ;;  %2425 = vrcp.f32 %v1696_v33 }
 0x282   : > { %v2418_v38 = vpop.eup %2417  ;;  %v1732_v39 = vadd.f32 %v1724_v36, %v1708_v35  ;;  %v1717_v41 = vsub.f32 1.0, %v2416_v37  ;;  %v1709_v43 = vmul.f32 %v2465_v51, %v2416_v37 }
 0x283   : > { %v1697_v42 = vadd.f32 1.0, %v2418_v38 }
 0x284   : > { %1741 = vadd.xlane.f32.xlu0 %v1732_v39  ;;  %v1725_v44 = vmul.f32 %v1717_v41, %v3107_v4  ;;  %v2467_v4 = vld [vmem:[%s2898_s29 + $0x20] sm:$0xff]  ;;  %s3229_s29 = scalar_lea.hbm %s3285_s9, %s2080_s1 }
 0x285   : > { %v2420_v45 = vpop.eup %2419  ;;  %2427 = vrcp.f32 %v1697_v42 }
 0x286   : > { %v2422_v56 = vpop.eup %2421  ;;  %v1733_v23 = vadd.f32 %v1725_v44, %v1709_v43  ;;  %v1718_v0 = vsub.f32 1.0, %v2420_v45  ;;  %v1710_v48 = vmul.f32 %v2466_v58, %v2420_v45 }
 0x287   : > { %v1698_v47 = vadd.f32 1.0, %v2422_v56 }
 0x288   : > { %1743 = vadd.xlane.f32.xlu1 %v1733_v23  ;;  %v1726_v49 = vmul.f32 %v1718_v0, %v3109_v12 }
 0x289   : > { %2429 = vrcp.f32 %v1698_v47 }
 0x28a   : > { %v2424_v50 = vpop.eup %2423  ;;  %v1734_v52 = vadd.f32 %v1726_v49, %v1710_v48 }
 0x28b   : > { %v1719_v53 = vsub.f32 1.0, %v2424_v50  ;;  %v1711_v54 = vmul.f32 %v2467_v4, %v2424_v50 }
 0x28c   : > { %1745 = vadd.xlane.f32.xlu1 %v1734_v52 }
 0x28d   : > { %v1727_v55 = vmul.f32 %v1719_v53, %v3111_v25 }
 0x28e   : > { %v2426_v61 = vpop.eup %2425 }
 0x28f   : > { %v1735_v22 = vadd.f32 %v1727_v55, %v1711_v54  ;;  %v1720_v16 = vsub.f32 1.0, %v2426_v61  ;;  %v1712_v59 = vmul.f32 %v2468_v57, %v2426_v61 }
 0x291   : > { %1747 = vadd.xlane.f32.xlu0 %v1735_v22  ;;  %v1728_v60 = vmul.f32 %v1720_v16, %v3113_v32 }
 0x292   : > { %v2428_v12 = vpop.eup %2427 }
 0x293   : > { %v1736_v11 = vadd.f32 %v1728_v60, %v1712_v59  ;;  %v1721_v62 = vsub.f32 1.0, %v2428_v12  ;;  %v1713_v1 = vmul.f32 %v2469_v63, %v2428_v12 }
 0x295   : > { %1749 = vadd.xlane.f32.xlu1 %v1736_v11  ;;  %v1729_v3 = vmul.f32 %v1721_v62, %v3115_v40 }
 0x296   : > { %v2430_v5 = vpop.eup %2429 }
 0x297   : > { %v1737_v6 = vadd.f32 %v1729_v3, %v1713_v1  ;;  %v1722_v25 = vsub.f32 1.0, %v2430_v5  ;;  %v1714_v8 = vmul.f32 %v2470_v7, %v2430_v5 }
 0x299   : > { %1751 = vadd.xlane.f32.xlu0 %v1737_v6  ;;  %v1730_v19 = vmul.f32 %v1722_v25, %v3117_v46 }
 0x29b   : > { %v1738_v9 = vadd.f32 %v1730_v19, %v1714_v8 }
 0x29d   : > { %1753 = vadd.xlane.f32.xlu1 %v1738_v9 }
 0x309   : > { %v1740_v10 = vpop.xlane.xlu0 %1739 }
 0x30a   : > { %v1756_v32 = vmul.f32 0.0078125, %v1740_v10 }
 0x30c   : > { %v3148_v13 = vsub.f32 %v1731_v31, %v1756_v32 }
 0x30d   : > { %v1742_v14 = vpop.xlane.xlu0 %1741 }
 0x30e   : > { %v1757_v15 = vmul.f32 0.0078125, %v1742_v14  ;;  %v1772_v17 = vmul.f32 %v3148_v13, %v3148_v13 }
 0x310   : > { %v3152_v40 = vsub.f32 %v1732_v39, %v1757_v15  ;;  %1780 = vadd.xlane.f32.xlu0 %v1772_v17 }
 0x311   : > { %v1744_v18 = vpop.xlane.xlu1 %1743 }
 0x312   : > { %v1758_v21 = vmul.f32 0.0078125, %v1744_v18  ;;  %v1773_v2 = vmul.f32 %v3152_v40, %v3152_v40 }
 0x314   : > { %v3156_v46 = vsub.f32 %v1733_v23, %v1758_v21  ;;  %1782 = vadd.xlane.f32.xlu1 %v1773_v2 }
 0x315   : > { %v1746_v24 = vpop.xlane.xlu1 %1745 }
 0x316   : > { %v1759_v26 = vmul.f32 0.0078125, %v1746_v24  ;;  %v1774_v27 = vmul.f32 %v3156_v46, %v3156_v46 }
 0x318   : > { %v3160_v20 = vsub.f32 %v1734_v52, %v1759_v26  ;;  %1784 = vadd.xlane.f32.xlu0 %v1774_v27 }
 0x31a   : > { %v1748_v28 = vpop.xlane.xlu0 %1747  ;;  %v1775_v30 = vmul.f32 %v3160_v20, %v3160_v20 }
 0x31b   : > { %v1760_v31 = vmul.f32 0.0078125, %v1748_v28 }
 0x31c   : > { %1786 = vadd.xlane.f32.xlu1 %v1775_v30  ;;  %v3183_v30 = vld [vmem:[%s3283_s7] ss:$0 sm:$0xff] }
 0x31d   : > { %v3164_v29 = vsub.f32 %v1735_v22, %v1760_v31 }
 0x31e   : > { %v1750_v33 = vpop.xlane.xlu1 %1749 }
 0x31f   : > { %v1761_v34 = vmul.f32 0.0078125, %v1750_v33  ;;  %v1776_v35 = vmul.f32 %v3164_v29, %v3164_v29 }
 0x321   : > { %v3168_v36 = vsub.f32 %v1736_v11, %v1761_v34  ;;  %1788 = vadd.xlane.f32.xlu0 %v1776_v35 }
 0x322   : > { %v1752_v37 = vpop.xlane.xlu0 %1751 }
 0x323   : > { %v1762_v38 = vmul.f32 0.0078125, %v1752_v37  ;;  %v1777_v39 = vmul.f32 %v3168_v36, %v3168_v36  ;;  %v3189_v37 = vld [vmem:[%s3284_s8] ss:$0 sm:$0xff] }
 0x325   : > { %v3172_v41 = vsub.f32 %v1737_v6, %v1762_v38  ;;  %1790 = vadd.xlane.f32.xlu1 %v1777_v39 }
 0x326   : > { %v1754_v42 = vpop.xlane.xlu1 %1753 }
 0x327   : > { %v1763_v51 = vmul.f32 0.0078125, %v1754_v42  ;;  %v1778_v43 = vmul.f32 %v3172_v41, %v3172_v41 }
 0x329   : > { %v3176_v44 = vsub.f32 %v1738_v9, %v1763_v51  ;;  %1792 = vadd.xlane.f32.xlu0 %v1778_v43 }
 0x32b   : > { %v1779_v45 = vmul.f32 %v3176_v44, %v3176_v44 }
 0x32d   : > { %1794 = vadd.xlane.f32.xlu1 %v1779_v45 }
 0x399   : > { %v1781_v56 = vpop.xlane.xlu0 %1780 }
 0x39a   : > { %v1796_v23 = vmul.f32 0.007874016, %v1781_v56 }
 0x39c   : > { %2431 = vrsqrt.f32 %v1796_v23  ;;  %vm1806_vm0 = vcmp.eq.f32.partialorder %v1796_v23, inf  ;;  %v1809_v54 = vand.u32 2147483648, %v1796_v23  ;;  %vm1808_vm1 = vcmp.eq.f32.partialorder %v1796_v23, 0.0 }
 0x39d   : > { %v1783_v0 = vpop.xlane.xlu1 %1782 }
 0x39e   : > { %v1797_v47 = vmul.f32 0.007874016, %v1783_v0 }
 0x3a0   : > { %2433 = vrsqrt.f32 %v1797_v47  ;;  %vm1813_vm2 = vcmp.eq.f32.partialorder %v1797_v47, inf  ;;  %v1816_v12 = vand.u32 2147483648, %v1797_v47  ;;  %vm1815_vm3 = vcmp.eq.f32.partialorder %v1797_v47, 0.0 }
 0x3a1   : > { %v1785_v58 = vpop.xlane.xlu0 %1784 }
 0x3a2   : > { %v1798_v48 = vmul.f32 0.007874016, %v1785_v58 }
 0x3a4   : > { %2435 = vrsqrt.f32 %v1798_v48  ;;  %vm1820_vm4 = vcmp.eq.f32.partialorder %v1798_v48, inf  ;;  %v1823_v25 = vand.u32 2147483648, %v1798_v48  ;;  %vm1822_vm5 = vcmp.eq.f32.partialorder %v1798_v48, 0.0 }
 0x3a5   : > { %v1787_v49 = vpop.xlane.xlu1 %1786 }
 0x3a6   : > { %v1799_v50 = vmul.f32 0.007874016, %v1787_v49 }
 0x3a8   : > { %2437 = vrsqrt.f32 %v1799_v50  ;;  %vm1827_vm6 = vcmp.eq.f32.partialorder %v1799_v50, inf  ;;  %v1830_v15 = vand.u32 2147483648, %v1799_v50  ;;  %vm1829_vm7 = vcmp.eq.f32.partialorder %v1799_v50, 0.0 }
 0x3a9   : > { %v2432_v52 = vpop.eup %2431 }
 0x3aa   : > { %v1805_v53 = vmul.f32 %v2432_v52, %v1796_v23  ;;  %v1789_v4 = vpop.xlane.xlu0 %1788 }
 0x3ab   : > { %v1800_v55 = vmul.f32 0.007874016, %v1789_v4 }
 0x3ac   : > { %v1807_v61 = vsel %vm1806_vm0, %v1796_v23, %v1805_v53 }
 0x3ad   : > { %v2434_v22 = vpop.eup %2433  ;;  %v1810_v16 = vsel %vm1808_vm1, %v1809_v54, %v1807_v61  ;;  %2439 = vrsqrt.f32 %v1800_v55  ;;  %vm1834_vm8 = vcmp.eq.f32.partialorder %v1800_v55, inf  ;;  %v1837_v27 = vand.u32 2147483648, %v1800_v55 }
 0x3ae   : > { %v1860_v57 = vadd.f32 1e-06, %v1810_v16  ;;  %v1812_v59 = vmul.f32 %v2434_v22, %v1797_v47  ;;  %v1791_v60 = vpop.xlane.xlu1 %1790  ;;  %vm1836_vm9 = vcmp.eq.f32.partialorder %v1800_v55, 0.0 }
 0x3af   : > { %v1801_v11 = vmul.f32 0.007874016, %v1791_v60 }
 0x3b0   : > { %2441 = vrcp.f32 %v1860_v57  ;;  %v1814_v62 = vsel %vm1813_vm2, %v1797_v47, %v1812_v59 }
 0x3b1   : > { %v2436_v63 = vpop.eup %2435  ;;  %v1817_v1 = vsel %vm1815_vm3, %v1816_v12, %v1814_v62  ;;  %2443 = vrsqrt.f32 %v1801_v11  ;;  %vm1841_vm10 = vcmp.eq.f32.partialorder %v1801_v11, inf  ;;  %v1844_v51 = vand.u32 2147483648, %v1801_v11 }
 0x3b2   : > { %v1861_v3 = vadd.f32 1e-06, %v1817_v1  ;;  %v1819_v5 = vmul.f32 %v2436_v63, %v1798_v48  ;;  %v1793_v6 = vpop.xlane.xlu0 %1792  ;;  %vm1843_vm11 = vcmp.eq.f32.partialorder %v1801_v11, 0.0 }
 0x3b3   : > { %v1802_v7 = vmul.f32 0.007874016, %v1793_v6 }
 0x3b4   : > { %2445 = vrcp.f32 %v1861_v3  ;;  %v1821_v8 = vsel %vm1820_vm4, %v1798_v48, %v1819_v5 }
 0x3b5   : > { %v2438_v19 = vpop.eup %2437  ;;  %v1824_v9 = vsel %vm1822_vm5, %v1823_v25, %v1821_v8  ;;  %2447 = vrsqrt.f32 %v1802_v7  ;;  %vm1848_vm12 = vcmp.eq.f32.partialorder %v1802_v7, inf  ;;  %v1851_v49 = vand.u32 2147483648, %v1802_v7 }
 0x3b6   : > { %v1862_v10 = vadd.f32 1e-06, %v1824_v9  ;;  %v1826_v32 = vmul.f32 %v2438_v19, %v1799_v50  ;;  %v1795_v14 = vpop.xlane.xlu1 %1794  ;;  %vm1850_vm13 = vcmp.eq.f32.partialorder %v1802_v7, 0.0 }
 0x3b7   : > { %v1803_v17 = vmul.f32 0.007874016, %v1795_v14 }
 0x3b8   : > { %2449 = vrcp.f32 %v1862_v10  ;;  %v1828_v18 = vsel %vm1827_vm6, %v1799_v50, %v1826_v32 }
 0x3b9   : > { %v1831_v21 = vsel %vm1829_vm7, %v1830_v15, %v1828_v18  ;;  %2451 = vrsqrt.f32 %v1803_v17  ;;  %vm1855_vm14 = vcmp.eq.f32.partialorder %v1803_v17, inf  ;;  %v1858_v16 = vand.u32 2147483648, %v1803_v17 }
 0x3ba   : > { %v2440_v2 = vpop.eup %2439  ;;  %v1863_v24 = vadd.f32 1e-06, %v1831_v21  ;;  %vm1857_vm15 = vcmp.eq.f32.partialorder %v1803_v17, 0.0 }
 0x3bb   : > { %v1833_v26 = vmul.f32 %v2440_v2, %v1800_v55 }
 0x3bc   : > { %2453 = vrcp.f32 %v1863_v24 }
 0x3bd   : > { %v2442_v28 = vpop.eup %2441  ;;  %v1835_v31 = vsel %vm1834_vm8, %v1800_v55, %v1833_v26 }
 0x3be   : > { %v2444_v33 = vpop.eup %2443  ;;  %v1884_v34 = vmul.f32 %v2442_v28, %v3148_v13  ;;  %v1838_v35 = vsel %vm1836_vm9, %v1837_v27, %v1835_v31 }
 0x3bf   : > { %v1864_v38 = vadd.f32 1e-06, %v1838_v35  ;;  %v1840_v39 = vmul.f32 %v2444_v33, %v1801_v11 }
 0x3c0   : > { %v1898_v42 = vmul.f32 %v3183_v30, %v1884_v34 }
 0x3c1   : > { %v2446_v43 = vpop.eup %2445  ;;  %2455 = vrcp.f32 %v1864_v38  ;;  %v1842_v45 = vsel %vm1841_vm10, %v1801_v11, %v1840_v39 }
 0x3c2   : > { %v2448_v56 = vpop.eup %2447  ;;  %v1912_v13 = vadd.f32 %v3189_v37, %v1898_v42  ;;  %v1885_v23 = vmul.f32 %v2446_v43, %v3152_v40  ;;  %v1845_v0 = vsel %vm1843_vm11, %v1844_v51, %v1842_v45 }
 0x3c3   : > { %v1865_v47 = vadd.f32 1e-06, %v1845_v0  ;;  %v1847_v58 = vmul.f32 %v2448_v56, %v1802_v7 }
 0x3c4   : > { %1920 = vst [vmem:[%s3196_s25] sm:$0xff] %v1912_v13  ;;  %v1899_v48 = vmul.f32 %v3183_v30, %v1885_v23 }
 0x3c5   : > { %v2450_v50 = vpop.eup %2449  ;;  %2457 = vrcp.f32 %v1865_v47  ;;  %v1849_v52 = vsel %vm1848_vm12, %v1802_v7, %v1847_v58 }
 0x3c6   : > { %v2452_v53 = vpop.eup %2451  ;;  %v1913_v40 = vadd.f32 %v3189_v37, %v1899_v48  ;;  %v1886_v4 = vmul.f32 %v2450_v50, %v3156_v46  ;;  %v1852_v54 = vsel %vm1850_vm13, %v1851_v49, %v1849_v52 }
 0x3c7   : > { %v1866_v55 = vadd.f32 1e-06, %v1852_v54  ;;  %v1854_v61 = vmul.f32 %v2452_v53, %v1803_v17 }
 0x3c8   : > { %1921 = vst [vmem:[%s3196_s25 + $0x8] sm:$0xff] %v1913_v40  ;;  %v1900_v22 = vmul.f32 %v3183_v30, %v1886_v4 }
 0x3c9   : > { %v2454_v57 = vpop.eup %2453  ;;  %2459 = vrcp.f32 %v1866_v55  ;;  %v1856_v59 = vsel %vm1855_vm14, %v1803_v17, %v1854_v61 }
 0x3ca   : > { %v1914_v60 = vadd.f32 %v3189_v37, %v1900_v22  ;;  %v1887_v12 = vmul.f32 %v2454_v57, %v3160_v20  ;;  %v1859_v46 = vsel %vm1857_vm15, %v1858_v16, %v1856_v59 }
 0x3cb   : > { %v1867_v11 = vadd.f32 1e-06, %v1859_v46 }
 0x3cc   : > { %1922 = vst [vmem:[%s3196_s25 + $0x10] sm:$0xff] %v1914_v60  ;;  %v1901_v62 = vmul.f32 %v3183_v30, %v1887_v12 }
 0x3cd   : > { %2461 = vrcp.f32 %v1867_v11 }
 0x3ce   : > { %v2456_v63 = vpop.eup %2455  ;;  %v1915_v1 = vadd.f32 %v3189_v37, %v1901_v62 }
 0x3cf   : > { %v1888_v3 = vmul.f32 %v2456_v63, %v3164_v29 }
 0x3d0   : > { %1923 = vst [vmem:[%s3196_s25 + $0x18] sm:$0xff] %v1915_v1 }
 0x3d1   : > { %v1902_v5 = vmul.f32 %v3183_v30, %v1888_v3 }
 0x3d2   : > { %v2458_v6 = vpop.eup %2457 }
 0x3d3   : > { %v1916_v20 = vadd.f32 %v3189_v37, %v1902_v5  ;;  %v1889_v25 = vmul.f32 %v2458_v6, %v3168_v36 }
 0x3d5   : > { %1924 = vst [vmem:[%s3196_s25 + $0x20] sm:$0xff] %v1916_v20  ;;  %v1903_v7 = vmul.f32 %v3183_v30, %v1889_v25 }
 0x3d6   : > { %v2460_v8 = vpop.eup %2459 }
 0x3d7   : > { %v1917_v19 = vadd.f32 %v3189_v37, %v1903_v7  ;;  %v1890_v29 = vmul.f32 %v2460_v8, %v3172_v41 }
 0x3d9   : > { %1925 = vst [vmem:[%s3196_s25 + $0x28] sm:$0xff] %v1917_v19  ;;  %v1904_v9 = vmul.f32 %v3183_v30, %v1890_v29 }
 0x3da   : > { %v2462_v10 = vpop.eup %2461 }
 0x3db   : > { %v1918_v32 = vadd.f32 %v3189_v37, %v1904_v9  ;;  %v1891_v14 = vmul.f32 %v2462_v10, %v3176_v44 }
 0x3dd   : > { %1926 = vst [vmem:[%s3196_s25 + $0x30] sm:$0xff] %v1918_v32  ;;  %v1905_v36 = vmul.f32 %v3183_v30, %v1891_v14 }
 0x3df   : > { %v1919_v41 = vadd.f32 %v3189_v37, %v1905_v36 }
 0x3e1   : > { %1927 = vst [vmem:[%s3196_s25 + $0x38] sm:$0xff] %v1919_v41 }
 0x3e2   : > { %2616 = shalt.err (!%p2613_p5)
}
 0x3e3   : > { %s2617_s23 = scalar_lea.hbm %s3229_s29, 1024  ;;  %s2621_s22 = scalar_lea.hbm %s3285_s9, 2048 }
 0x3e4   : > { %p2618_p0 = scmp.ne.s32.totalorder %s3229_s29, %s2617_s23  ;;  %p2622_p10 = scmp.lt.s32.totalorder %s3229_s29, %s3285_s9 }
 0x3e5   : > { %p2623_p1 = scmp.lt.s32.totalorder %s2621_s22, %s2617_s23 }
 0x3e6   : > { %p2619_p7 = pnand %p2618_p0, %p3313_p8 }
 0x3e7   : > { %p2624_p2 = por %p2623_p1, %p2622_p10 }
 0x3e8   : > { %p2620_p11 = pneg %p2619_p7 }
 0x3ea   : > { %p2625_p4 = pnand %p2624_p2, %p2620_p11 }
 0x3ec   : > { %2628 = shalt.err (!%p2625_p4)
}
 0x3ed   : > { %s2688_s3 = smov 128   ;;  %s2689_s27 = smov 8  }
 0x3ee   : > { %2323 = dma.vmem_to_hbm [thread:$0]  (%p3313_p8), %s3231_s28, 1024, %s3229_s29, %s1929_s15, %s2688_s3, %s2688_s3, %s2689_s27  }
 0x3ef PF: > { %s1957_s17 = sand.u32 1, %s2663_s30   ;;  %p3314_p12 = scmp.ne.s32.totalorder %s3296_s16, 0 }
 0x3f0   : > { %p3315_p6 = scmp.ge.s32.totalorder %s2675_s12, 2  ;;  %s1958_s13 = scalar_lea.sflag [#allocation4], %s1957_s17 }
 0x3f2   : > { %p2343_p3 = pnand %p3315_p6, %p3314_p12 }
 0x3f4   : > { %p2344_p9 = pneg %p2343_p3 }
 0x3f6   : > { %2658 = dma.done.wait (%p2344_p9), %s1958_s13, 1024  }
 0x3f7   : > { %2660 = vsyncadd (%p2344_p9), %s1958_s13, 4294966272  ;;  %p24_p13 = scmp.ge.s32.totalorder %s2834_s21, 4   ;;  %s3316_s30 = smov %s2667_s10 }
 0x3f8   : > { %s3317_s10 = smov %s2671_s11  ;;  %s3318_s11 = smov %s2843_s24 }
 0x3f9   : > { %s3319_s12 = smov %s2834_s21  ;;  %26 = sbr.rel (!%p24_p13) target bundleno = 11 (0xb), region = 117 }
 0x3fe   :  { %1963 = vsyncpa [#allocation3], 1 }
 0x3ff   :  { %1965 = vsyncpa [#allocation3 + $0x1], 1 }
 0x400   :  { %1966 = vsyncpa [#allocation6], 1 }
 0x401   :  { %1967 = vsyncpa [#allocation9], 1 }
 0x402   :  { %1968 = vsyncpa [#allocation4], 1 }
 0x403   :  { %1970 = vsyncpa [#allocation4 + $0x1], 1 }

</bundles_post_ra>
